<compile_context>
chip_gen: v7x
topology: tpu7x:2x2x1
jax: 0.10.0
libtpu: 0.0.40
codegen_flags: <defaults>
</compile_context>

<pallas_src>
import math

import numpy as np
import jax
import jax.numpy as jnp
from jax.experimental import pallas as pl
from jax.experimental.pallas import tpu as pltpu

# ---- problem sizes (small, consistent with the module) ----------------------
B, T, S, E = 2, 8, 16, 32          # batch, target seq, context seq, n_embd
N_HEAD = 4
HD = E // N_HEAD                    # head dim
FFN = 64                            # ffn_hidden
EPS = 1e-5
SCALE = 1.0 / math.sqrt(HD)
NEG_INF = -1e30

N = B * T                           # flattened query rows (16)
BS = B * S                          # flattened context rows (32)

# ---- packed weight slab (E, 320): column offsets (no 128-lane tile crossings)
C_WQKV_S = 0          # (E, 3E)  fused Wq|Wk|Wv, self-attention
C_WO_S   = 3 * E      # (E, E)   output projection, self-attention
C_WQ_X   = 4 * E      # (E, E)   Wq, cross-attention
C_WKV_X  = 5 * E      # (E, 2E)  fused Wk|Wv, cross-attention
C_WO_X   = 7 * E      # (E, E)   output projection, cross-attention
C_W1     = 8 * E      # (E, FFN) MLP first linear
W_COLS   = 8 * E + FFN

# ---- packed bias / LayerNorm slab (16, 128): one vector per row, zero-padded
R_LN1G, R_LN1B = 0, 1
R_BQKV_S = 2            # (3E,)
R_BO_S = 3
R_LN3G, R_LN3B = 4, 5
R_BQ_X = 6
R_BKV_X = 7             # (2E,)
R_BO_X = 8
R_LN4G, R_LN4B = 9, 10
R_B1 = 11               # (FFN,)
R_B2 = 12
V_ROWS = 16

PARAM_ORDER = [
    ("ln1_g", (1, E)), ("ln1_b", (1, E)),
    ("attn_wq", (E, E)), ("attn_bq", (1, E)),
    ("attn_wk", (E, E)), ("attn_bk", (1, E)),
    ("attn_wv", (E, E)), ("attn_bv", (1, E)),
    ("attn_wo", (E, E)), ("attn_bo", (1, E)),
    ("ln3_g", (1, E)), ("ln3_b", (1, E)),
    ("xattn_wq", (E, E)), ("xattn_bq", (1, E)),
    ("xattn_wk", (E, E)), ("xattn_bk", (1, E)),
    ("xattn_wv", (E, E)), ("xattn_bv", (1, E)),
    ("xattn_wo", (E, E)), ("xattn_bo", (1, E)),
    ("ln4_g", (1, E)), ("ln4_b", (1, E)),
    ("mlp_w1", (E, FFN)), ("mlp_b1", (1, FFN)),
    ("mlp_w2", (FFN, E)), ("mlp_b2", (1, E)),
]

# ---- precomputed additive attention biases (constants; passed as inputs) -----
_row = np.arange(N)[:, None]
_col_s = np.arange(N)[None, :]
_col_x = np.arange(BS)[None, :]
# self-attn: same batch element AND causal within it
SELF_BIAS = np.where(((_row // T) == (_col_s // T)) & ((_row % T) >= (_col_s % T)),
                     0.0, NEG_INF).astype(np.float32)          # (N, N)
# cross-attn: query row b*T+t may attend to context rows b*S .. b*S+S-1
CROSS_BIAS = np.where((_row // T) == (_col_x // S),
                      0.0, NEG_INF).astype(np.float32)         # (N, BS)


# ---- pure-JAX reference (same math as the module; for correctness check) -----
def _layernorm(h, g, b):
    mu = jnp.mean(h, axis=-1, keepdims=True)
    var = jnp.mean((h - mu) ** 2, axis=-1, keepdims=True)   # biased, like torch
    return (h - mu) * jax.lax.rsqrt(var + EPS) * g + b


def _gelu(h):
    return 0.5 * h * (1.0 + jax.lax.erf(h * (1.0 / math.sqrt(2.0))))


def _mha(h, kv, wq, bq, wk, bk, wv, bv, wo, bo, causal):
    tq, tk = h.shape[0], kv.shape[0]
    acc = jnp.zeros((tq, E), jnp.float32)
    for i in range(N_HEAD):
        sl = slice(i * HD, (i + 1) * HD)
        qh = jnp.dot(h, wq[:, sl]) + bq[:, sl]
        kh = jnp.dot(kv, wk[:, sl]) + bk[:, sl]
        vh = jnp.dot(kv, wv[:, sl]) + bv[:, sl]
        s = jnp.dot(qh, kh.T) * SCALE
        if causal:
            r = jax.lax.broadcasted_iota(jnp.int32, (tq, tk), 0)
            c = jax.lax.broadcasted_iota(jnp.int32, (tq, tk), 1)
            s = jnp.where(r >= c, s, NEG_INF)
        m = jnp.max(s, axis=-1, keepdims=True)
        e = jnp.exp(s - m)
        p = e / jnp.sum(e, axis=-1, keepdims=True)
        acc = acc + jnp.dot(jnp.dot(p, vh), wo[sl, :])
    return acc + bo


def _mlp(h, w1, b1, w2, b2):
    return jnp.dot(_gelu(jnp.dot(h, w1) + b1), w2) + b2


def _block_forward(x, ctx, p):
    h1 = _layernorm(x, p["ln1_g"], p["ln1_b"])
    x = x + _mha(h1, h1, p["attn_wq"], p["attn_bq"], p["attn_wk"], p["attn_bk"],
                 p["attn_wv"], p["attn_bv"], p["attn_wo"], p["attn_bo"], causal=True)
    h3 = _layernorm(x, p["ln3_g"], p["ln3_b"])
    x = x + _mha(h3, ctx, p["xattn_wq"], p["xattn_bq"], p["xattn_wk"], p["xattn_bk"],
                 p["xattn_wv"], p["xattn_bv"], p["xattn_wo"], p["xattn_bo"], causal=False)
    h4 = _layernorm(x, p["ln4_g"], p["ln4_b"])
    x = x + _mlp(h4, p["mlp_w1"], p["mlp_b1"], p["mlp_w2"], p["mlp_b2"])
    return x


# ---- Pallas kernel -----------------------------------------------------------
def transformer_block_kernel(x_ref, ctx_ref, wm_ref, w2_ref, vec_ref,
                             sbias_ref, cbias_ref, o_ref):
    f32 = jnp.float32
    x = x_ref[...]                      # (N, E)
    ctx = ctx_ref[...]                  # (BS, E)
    vec = vec_ref[...]                  # (V_ROWS, 128)
    self_bias = sbias_ref[...]          # (N, N) additive mask (0 / -1e30)
    cross_bias = cbias_ref[...]         # (N, BS)

    def layernorm(h, g_row, b_row):
        g = vec[g_row:g_row + 1, :E]
        b = vec[b_row:b_row + 1, :E]
        mu = jnp.mean(h, axis=-1, keepdims=True)
        var = jnp.mean((h - mu) ** 2, axis=-1, keepdims=True)   # biased (torch)
        return (h - mu) * jax.lax.rsqrt(var + EPS) * g + b

    def gelu(h):
        return 0.5 * h * (1.0 + jax.lax.erf(h * (1.0 / math.sqrt(2.0))))

    def attend(q, k, v, bias):
        # q: (N, E); k, v: (M, E); bias: (N, M). Heads live along lanes of the
        # fused activations; per-head scores use a transposed-RHS dot_general.
        outs = []
        for h in range(N_HEAD):
            sl = slice(h * HD, (h + 1) * HD)
            s = jax.lax.dot_general(
                q[:, sl], k[:, sl], (((1,), (1,)), ((), ())),
                preferred_element_type=f32) * SCALE + bias
            m = jnp.max(s, axis=-1, keepdims=True)
            e = jnp.exp(s - m)
            denom = jnp.sum(e, axis=-1, keepdims=True)
            p = e * pl.reciprocal(denom, approx=True)
            outs.append(jnp.dot(p, v[:, sl], preferred_element_type=f32))
        return jnp.concatenate(outs, axis=-1)                   # (N, E)

    # ---- self-attention branch (causal) -------------------------------------
    h1 = layernorm(x, R_LN1G, R_LN1B)
    qkv = jnp.dot(h1, wm_ref[:, C_WQKV_S:C_WQKV_S + 3 * E],
                  preferred_element_type=f32) + vec[R_BQKV_S:R_BQKV_S + 1, :3 * E]
    heads = attend(qkv[:, 0:E], qkv[:, E:2 * E], qkv[:, 2 * E:3 * E], self_bias)
    attn = jnp.dot(heads, wm_ref[:, C_WO_S:C_WO_S + E],
                   preferred_element_type=f32) + vec[R_BO_S:R_BO_S + 1, :E]
    x = x + attn

    # ---- cross-attention branch (K/V from context) ---------------------------
    h3 = layernorm(x, R_LN3G, R_LN3B)
    qx = jnp.dot(h3, wm_ref[:, C_WQ_X:C_WQ_X + E],
                 preferred_element_type=f32) + vec[R_BQ_X:R_BQ_X + 1, :E]
    kv = jnp.dot(ctx, wm_ref[:, C_WKV_X:C_WKV_X + 2 * E],
                 preferred_element_type=f32) + vec[R_BKV_X:R_BKV_X + 1, :2 * E]
    headsx = attend(qx, kv[:, 0:E], kv[:, E:2 * E], cross_bias)
    xattn = jnp.dot(headsx, wm_ref[:, C_WO_X:C_WO_X + E],
                    preferred_element_type=f32) + vec[R_BO_X:R_BO_X + 1, :E]
    x = x + xattn

    # ---- MLP branch -----------------------------------------------------------
    h4 = layernorm(x, R_LN4G, R_LN4B)
    z = jnp.dot(h4, wm_ref[:, C_W1:C_W1 + FFN],
                preferred_element_type=f32) + vec[R_B1:R_B1 + 1, :FFN]
    y = jnp.dot(gelu(z), w2_ref[...],
                preferred_element_type=f32) + vec[R_B2:R_B2 + 1, :E]

    o_ref[...] = x + y


# ---- parameter packing --------------------------------------------------------
def pack_params(p):
    wmat = jnp.concatenate([
        p["attn_wq"], p["attn_wk"], p["attn_wv"],     # C_WQKV_S
        p["attn_wo"],                                  # C_WO_S
        p["xattn_wq"],                                 # C_WQ_X
        p["xattn_wk"], p["xattn_wv"],                  # C_WKV_X
        p["xattn_wo"],                                 # C_WO_X
        p["mlp_w1"],                                   # C_W1
    ], axis=1).astype(jnp.float32)                     # (E, 320)
    assert wmat.shape == (E, W_COLS)

    def row(*vs):
        v = jnp.concatenate([jnp.asarray(a).reshape(-1) for a in vs])
        return jnp.pad(v, (0, 128 - v.shape[0]))

    rows = [
        row(p["ln1_g"]), row(p["ln1_b"]),
        row(p["attn_bq"], p["attn_bk"], p["attn_bv"]),
        row(p["attn_bo"]),
        row(p["ln3_g"]), row(p["ln3_b"]),
        row(p["xattn_bq"]),
        row(p["xattn_bk"], p["xattn_bv"]),
        row(p["xattn_bo"]),
        row(p["ln4_g"]), row(p["ln4_b"]),
        row(p["mlp_b1"]),
        row(p["mlp_b2"]),
    ]
    while len(rows) < V_ROWS:
        rows.append(jnp.zeros((128,), jnp.float32))
    vec = jnp.stack(rows, axis=0).astype(jnp.float32)  # (V_ROWS, 128)
    return wmat, p["mlp_w2"].astype(jnp.float32), vec


# ---- wrapper -------------------------------------------------------------------
def transformer_block(x, ctx, params):
    """x: (B,T,E), ctx: (B,S,E), params: dict name->array. Returns (B,T,E)."""
    wmat, w2, vec = pack_params(params)
    x2 = x.reshape(N, E)
    ctx2 = ctx.reshape(BS, E)
    sbias = jnp.asarray(SELF_BIAS)
    cbias = jnp.asarray(CROSS_BIAS)

    vmem = pltpu.MemorySpace.VMEM
    out = pl.pallas_call(
        transformer_block_kernel,
        out_shape=jax.ShapeDtypeStruct((N, E), jnp.float32),
        in_specs=[pl.BlockSpec(memory_space=vmem)] * 7,
        out_specs=pl.BlockSpec(memory_space=vmem),
    )(x2, ctx2, wmat, w2, vec, sbias, cbias)
    return out.reshape(B, T, E)


# ---- deterministic parameter init ----------------------------------------------
def init_params(key):
    params = {}
    keys = jax.random.split(key, len(PARAM_ORDER))
    for (name, shape), k in zip(PARAM_ORDER, keys):
        if name.endswith("_g"):                               # LayerNorm gamma
            params[name] = jnp.ones(shape, jnp.float32)
        elif name.endswith("_b") and name.startswith("ln"):   # LayerNorm beta
            params[name] = jnp.zeros(shape, jnp.float32)
        elif name.startswith(("attn_b", "xattn_b", "mlp_b")):  # linear biases
            params[name] = 0.01 * jax.random.normal(k, shape, jnp.float32)
        else:                                                  # linear weights
            params[name] = 0.02 * jax.random.normal(k, shape, jnp.float32)
    return params


if __name__ == "__main__":
    key = jax.random.PRNGKey(0)
    kx, kc, kp = jax.random.split(key, 3)
    x = jax.random.normal(kx, (B, T, E), jnp.float32)
    ctx = jax.random.normal(kc, (B, S, E), jnp.float32)
    params = init_params(kp)

    out = jax.block_until_ready(transformer_block(x, ctx, params))

    # correctness check vs. pure-JAX reference of the same math
    ref = jax.vmap(lambda xb, cb: _block_forward(xb, cb, params))(x, ctx)
    assert out.shape == (B, T, E)
    err = float(jnp.max(jnp.abs(out - ref)))
    # tolerance allows for the approximate EUP reciprocal in the softmax
    # (approx=False recovers <1e-5 agreement).
    assert jnp.allclose(out, ref, atol=2e-3, rtol=2e-3), f"max abs err {err}"

    print("KERNEL_OK")
</pallas_src>

<mosaic_0001>
module attributes {stable_mosaic.version = 11 : i64} {
  func.func @transformer_block_kernel(%arg0: memref<16x32xf32, #tpu.memory_space<vmem>>, %arg1: memref<32x32xf32, #tpu.memory_space<vmem>>, %arg2: memref<32x320xf32, #tpu.memory_space<vmem>>, %arg3: memref<64x32xf32, #tpu.memory_space<vmem>>, %arg4: memref<16x128xf32, #tpu.memory_space<vmem>>, %arg5: memref<16x16xf32, #tpu.memory_space<vmem>>, %arg6: memref<16x32xf32, #tpu.memory_space<vmem>>, %arg7: memref<16x32xf32, #tpu.memory_space<vmem>>) attributes {dimension_semantics = [], scalar_prefetch = 0 : i64, scratch_operands = 0 : i64, tpu.core_type = #tpu.core_type<tc>} {
    %c0 = arith.constant 0 : index
    %c0_0 = arith.constant 0 : index
    %0 = vector.load %arg0[%c0, %c0_0] : memref<16x32xf32, #tpu.memory_space<vmem>>, vector<16x32xf32>
    %c0_1 = arith.constant 0 : index
    %c0_2 = arith.constant 0 : index
    %1 = vector.load %arg1[%c0_1, %c0_2] : memref<32x32xf32, #tpu.memory_space<vmem>>, vector<32x32xf32>
    %c0_3 = arith.constant 0 : index
    %c0_4 = arith.constant 0 : index
    %2 = vector.load %arg4[%c0_3, %c0_4] : memref<16x128xf32, #tpu.memory_space<vmem>>, vector<16x128xf32>
    %c0_5 = arith.constant 0 : index
    %c0_6 = arith.constant 0 : index
    %3 = vector.load %arg5[%c0_5, %c0_6] : memref<16x16xf32, #tpu.memory_space<vmem>>, vector<16x16xf32>
    %c0_7 = arith.constant 0 : index
    %c0_8 = arith.constant 0 : index
    %4 = vector.load %arg6[%c0_7, %c0_8] : memref<16x32xf32, #tpu.memory_space<vmem>>, vector<16x32xf32>
    %5 = vector.extract_strided_slice %2 {offsets = [0, 0], sizes = [1, 32], strides = [1, 1]} : vector<16x128xf32> to vector<1x32xf32>
    %6 = vector.extract_strided_slice %2 {offsets = [1, 0], sizes = [1, 32], strides = [1, 1]} : vector<16x128xf32> to vector<1x32xf32>
    %cst = arith.constant dense<0.000000e+00> : vector<16xf32>
    %7 = vector.multi_reduction <add>, %0, %cst [1] : vector<16x32xf32> to vector<16xf32>
    %8 = vector.shape_cast %7 : vector<16xf32> to vector<16x1xf32>
    %cst_9 = arith.constant 3.200000e+01 : f32
    %9 = vector.broadcast %cst_9 : f32 to vector<16x1xf32>
    %10 = arith.divf %8, %9 : vector<16x1xf32>
    %11 = vector.broadcast %10 : vector<16x1xf32> to vector<16x32xf32>
    %12 = arith.subf %0, %11 : vector<16x32xf32>
    %13 = arith.mulf %12, %12 : vector<16x32xf32>
    %cst_10 = arith.constant dense<0.000000e+00> : vector<16xf32>
    %14 = vector.multi_reduction <add>, %13, %cst_10 [1] : vector<16x32xf32> to vector<16xf32>
    %15 = vector.shape_cast %14 : vector<16xf32> to vector<16x1xf32>
    %cst_11 = arith.constant 3.200000e+01 : f32
    %16 = vector.broadcast %cst_11 : f32 to vector<16x1xf32>
    %17 = arith.divf %15, %16 : vector<16x1xf32>
    %18 = vector.broadcast %10 : vector<16x1xf32> to vector<16x32xf32>
    %19 = arith.subf %0, %18 : vector<16x32xf32>
    %cst_12 = arith.constant 9.99999974E-6 : f32
    %20 = vector.broadcast %cst_12 : f32 to vector<16x1xf32>
    %21 = arith.addf %17, %20 : vector<16x1xf32>
    %22 = math.rsqrt %21 : vector<16x1xf32>
    %23 = vector.broadcast %22 : vector<16x1xf32> to vector<16x32xf32>
    %24 = arith.mulf %19, %23 : vector<16x32xf32>
    %25 = vector.broadcast %5 : vector<1x32xf32> to vector<16x32xf32>
    %26 = arith.mulf %24, %25 : vector<16x32xf32>
    %27 = vector.broadcast %6 : vector<1x32xf32> to vector<16x32xf32>
    %28 = arith.addf %26, %27 : vector<16x32xf32>
    %c0_13 = arith.constant 0 : index
    %c0_14 = arith.constant 0 : index
    %29 = vector.load %arg2[%c0_13, %c0_14] : memref<32x320xf32, #tpu.memory_space<vmem>>, vector<32x96xf32>
    %cst_15 = arith.constant dense<0.000000e+00> : vector<16x96xf32>
    %30 = tpu.matmul %28, %29, %cst_15 {dimension_numbers = #tpu.dot_dimension_numbers<[1], [0], [0], [1], [0, 0, 1, 1], [], []>} : vector<16x32xf32>, vector<32x96xf32>, vector<16x96xf32> -> vector<16x96xf32>
    %31 = vector.extract_strided_slice %2 {offsets = [2, 0], sizes = [1, 96], strides = [1, 1]} : vector<16x128xf32> to vector<1x96xf32>
    %32 = vector.broadcast %31 : vector<1x96xf32> to vector<16x96xf32>
    %33 = arith.addf %30, %32 : vector<16x96xf32>
    %34 = vector.extract_strided_slice %33 {offsets = [0, 0], sizes = [16, 32], strides = [1, 1]} : vector<16x96xf32> to vector<16x32xf32>
    %35 = vector.extract_strided_slice %33 {offsets = [0, 32], sizes = [16, 32], strides = [1, 1]} : vector<16x96xf32> to vector<16x32xf32>
    %36 = vector.extract_strided_slice %33 {offsets = [0, 64], sizes = [16, 32], strides = [1, 1]} : vector<16x96xf32> to vector<16x32xf32>
    %37 = vector.extract_strided_slice %34 {offsets = [0, 0], sizes = [16, 8], strides = [1, 1]} : vector<16x32xf32> to vector<16x8xf32>
    %38 = vector.extract_strided_slice %35 {offsets = [0, 0], sizes = [16, 8], strides = [1, 1]} : vector<16x32xf32> to vector<16x8xf32>
    %cst_16 = arith.constant dense<0.000000e+00> : vector<16x16xf32>
    %39 = tpu.matmul %37, %38, %cst_16 {dimension_numbers = #tpu.dot_dimension_numbers<[1], [1], [0], [0], [0, 0, 1, 0], [], []>} : vector<16x8xf32>, vector<16x8xf32>, vector<16x16xf32> -> vector<16x16xf32>
    %cst_17 = arith.constant 0.353553385 : f32
    %40 = vector.broadcast %cst_17 : f32 to vector<16x16xf32>
    %41 = arith.mulf %39, %40 : vector<16x16xf32>
    %42 = arith.addf %41, %3 : vector<16x16xf32>
    %cst_18 = arith.constant dense<0xFF800000> : vector<16xf32>
    %43 = vector.multi_reduction <maximumf>, %42, %cst_18 [1] : vector<16x16xf32> to vector<16xf32>
    %44 = vector.shape_cast %43 : vector<16xf32> to vector<16x1xf32>
    %45 = vector.broadcast %44 : vector<16x1xf32> to vector<16x16xf32>
    %46 = arith.subf %42, %45 : vector<16x16xf32>
    %47 = math.exp %46 : vector<16x16xf32>
    %cst_19 = arith.constant dense<0.000000e+00> : vector<16xf32>
    %48 = vector.multi_reduction <add>, %47, %cst_19 [1] : vector<16x16xf32> to vector<16xf32>
    %49 = vector.shape_cast %48 : vector<16xf32> to vector<16x1xf32>
    %50 = tpu.reciprocal %49 {approx = true} : vector<16x1xf32> -> vector<16x1xf32>
    %51 = vector.broadcast %50 : vector<16x1xf32> to vector<16x16xf32>
    %52 = arith.mulf %47, %51 : vector<16x16xf32>
    %53 = vector.extract_strided_slice %36 {offsets = [0, 0], sizes = [16, 8], strides = [1, 1]} : vector<16x32xf32> to vector<16x8xf32>
    %cst_20 = arith.constant dense<0.000000e+00> : vector<16x8xf32>
    %54 = tpu.matmul %52, %53, %cst_20 {dimension_numbers = #tpu.dot_dimension_numbers<[1], [0], [0], [1], [0, 0, 1, 1], [], []>} : vector<16x16xf32>, vector<16x8xf32>, vector<16x8xf32> -> vector<16x8xf32>
    %55 = vector.extract_strided_slice %34 {offsets = [0, 8], sizes = [16, 8], strides = [1, 1]} : vector<16x32xf32> to vector<16x8xf32>
    %56 = vector.extract_strided_slice %35 {offsets = [0, 8], sizes = [16, 8], strides = [1, 1]} : vector<16x32xf32> to vector<16x8xf32>
    %cst_21 = arith.constant dense<0.000000e+00> : vector<16x16xf32>
    %57 = tpu.matmul %55, %56, %cst_21 {dimension_numbers = #tpu.dot_dimension_numbers<[1], [1], [0], [0], [0, 0, 1, 0], [], []>} : vector<16x8xf32>, vector<16x8xf32>, vector<16x16xf32> -> vector<16x16xf32>
    %cst_22 = arith.constant 0.353553385 : f32
    %58 = vector.broadcast %cst_22 : f32 to vector<16x16xf32>
    %59 = arith.mulf %57, %58 : vector<16x16xf32>
    %60 = arith.addf %59, %3 : vector<16x16xf32>
    %cst_23 = arith.constant dense<0xFF800000> : vector<16xf32>
    %61 = vector.multi_reduction <maximumf>, %60, %cst_23 [1] : vector<16x16xf32> to vector<16xf32>
    %62 = vector.shape_cast %61 : vector<16xf32> to vector<16x1xf32>
    %63 = vector.broadcast %62 : vector<16x1xf32> to vector<16x16xf32>
    %64 = arith.subf %60, %63 : vector<16x16xf32>
    %65 = math.exp %64 : vector<16x16xf32>
    %cst_24 = arith.constant dense<0.000000e+00> : vector<16xf32>
    %66 = vector.multi_reduction <add>, %65, %cst_24 [1] : vector<16x16xf32> to vector<16xf32>
    %67 = vector.shape_cast %66 : vector<16xf32> to vector<16x1xf32>
    %68 = tpu.reciprocal %67 {approx = true} : vector<16x1xf32> -> vector<16x1xf32>
    %69 = vector.broadcast %68 : vector<16x1xf32> to vector<16x16xf32>
    %70 = arith.mulf %65, %69 : vector<16x16xf32>
    %71 = vector.extract_strided_slice %36 {offsets = [0, 8], sizes = [16, 8], strides = [1, 1]} : vector<16x32xf32> to vector<16x8xf32>
    %cst_25 = arith.constant dense<0.000000e+00> : vector<16x8xf32>
    %72 = tpu.matmul %70, %71, %cst_25 {dimension_numbers = #tpu.dot_dimension_numbers<[1], [0], [0], [1], [0, 0, 1, 1], [], []>} : vector<16x16xf32>, vector<16x8xf32>, vector<16x8xf32> -> vector<16x8xf32>
    %73 = vector.extract_strided_slice %34 {offsets = [0, 16], sizes = [16, 8], strides = [1, 1]} : vector<16x32xf32> to vector<16x8xf32>
    %74 = vector.extract_strided_slice %35 {offsets = [0, 16], sizes = [16, 8], strides = [1, 1]} : vector<16x32xf32> to vector<16x8xf32>
    %cst_26 = arith.constant dense<0.000000e+00> : vector<16x16xf32>
    %75 = tpu.matmul %73, %74, %cst_26 {dimension_numbers = #tpu.dot_dimension_numbers<[1], [1], [0], [0], [0, 0, 1, 0], [], []>} : vector<16x8xf32>, vector<16x8xf32>, vector<16x16xf32> -> vector<16x16xf32>
    %cst_27 = arith.constant 0.353553385 : f32
    %76 = vector.broadcast %cst_27 : f32 to vector<16x16xf32>
    %77 = arith.mulf %75, %76 : vector<16x16xf32>
    %78 = arith.addf %77, %3 : vector<16x16xf32>
    %cst_28 = arith.constant dense<0xFF800000> : vector<16xf32>
    %79 = vector.multi_reduction <maximumf>, %78, %cst_28 [1] : vector<16x16xf32> to vector<16xf32>
    %80 = vector.shape_cast %79 : vector<16xf32> to vector<16x1xf32>
    %81 = vector.broadcast %80 : vector<16x1xf32> to vector<16x16xf32>
    %82 = arith.subf %78, %81 : vector<16x16xf32>
    %83 = math.exp %82 : vector<16x16xf32>
    %cst_29 = arith.constant dense<0.000000e+00> : vector<16xf32>
    %84 = vector.multi_reduction <add>, %83, %cst_29 [1] : vector<16x16xf32> to vector<16xf32>
    %85 = vector.shape_cast %84 : vector<16xf32> to vector<16x1xf32>
    %86 = tpu.reciprocal %85 {approx = true} : vector<16x1xf32> -> vector<16x1xf32>
    %87 = vector.broadcast %86 : vector<16x1xf32> to vector<16x16xf32>
    %88 = arith.mulf %83, %87 : vector<16x16xf32>
    %89 = vector.extract_strided_slice %36 {offsets = [0, 16], sizes = [16, 8], strides = [1, 1]} : vector<16x32xf32> to vector<16x8xf32>
    %cst_30 = arith.constant dense<0.000000e+00> : vector<16x8xf32>
    %90 = tpu.matmul %88, %89, %cst_30 {dimension_numbers = #tpu.dot_dimension_numbers<[1], [0], [0], [1], [0, 0, 1, 1], [], []>} : vector<16x16xf32>, vector<16x8xf32>, vector<16x8xf32> -> vector<16x8xf32>
    %91 = vector.extract_strided_slice %34 {offsets = [0, 24], sizes = [16, 8], strides = [1, 1]} : vector<16x32xf32> to vector<16x8xf32>
    %92 = vector.extract_strided_slice %35 {offsets = [0, 24], sizes = [16, 8], strides = [1, 1]} : vector<16x32xf32> to vector<16x8xf32>
    %cst_31 = arith.constant dense<0.000000e+00> : vector<16x16xf32>
    %93 = tpu.matmul %91, %92, %cst_31 {dimension_numbers = #tpu.dot_dimension_numbers<[1], [1], [0], [0], [0, 0, 1, 0], [], []>} : vector<16x8xf32>, vector<16x8xf32>, vector<16x16xf32> -> vector<16x16xf32>
    %cst_32 = arith.constant 0.353553385 : f32
    %94 = vector.broadcast %cst_32 : f32 to vector<16x16xf32>
    %95 = arith.mulf %93, %94 : vector<16x16xf32>
    %96 = arith.addf %95, %3 : vector<16x16xf32>
    %cst_33 = arith.constant dense<0xFF800000> : vector<16xf32>
    %97 = vector.multi_reduction <maximumf>, %96, %cst_33 [1] : vector<16x16xf32> to vector<16xf32>
    %98 = vector.shape_cast %97 : vector<16xf32> to vector<16x1xf32>
    %99 = vector.broadcast %98 : vector<16x1xf32> to vector<16x16xf32>
    %100 = arith.subf %96, %99 : vector<16x16xf32>
    %101 = math.exp %100 : vector<16x16xf32>
    %cst_34 = arith.constant dense<0.000000e+00> : vector<16xf32>
    %102 = vector.multi_reduction <add>, %101, %cst_34 [1] : vector<16x16xf32> to vector<16xf32>
    %103 = vector.shape_cast %102 : vector<16xf32> to vector<16x1xf32>
    %104 = tpu.reciprocal %103 {approx = true} : vector<16x1xf32> -> vector<16x1xf32>
    %105 = vector.broadcast %104 : vector<16x1xf32> to vector<16x16xf32>
    %106 = arith.mulf %101, %105 : vector<16x16xf32>
    %107 = vector.extract_strided_slice %36 {offsets = [0, 24], sizes = [16, 8], strides = [1, 1]} : vector<16x32xf32> to vector<16x8xf32>
    %cst_35 = arith.constant dense<0.000000e+00> : vector<16x8xf32>
    %108 = tpu.matmul %106, %107, %cst_35 {dimension_numbers = #tpu.dot_dimension_numbers<[1], [0], [0], [1], [0, 0, 1, 1], [], []>} : vector<16x16xf32>, vector<16x8xf32>, vector<16x8xf32> -> vector<16x8xf32>
    %109 = tpu.concatenate %54, %72, %90, %108 in 1 : vector<16x8xf32>, vector<16x8xf32>, vector<16x8xf32>, vector<16x8xf32> -> vector<16x32xf32>
    %c0_36 = arith.constant 0 : index
    %c96 = arith.constant 96 : index
    %110 = vector.load %arg2[%c0_36, %c96] : memref<32x320xf32, #tpu.memory_space<vmem>>, vector<32x32xf32>
    %cst_37 = arith.constant dense<0.000000e+00> : vector<16x32xf32>
    %111 = tpu.matmul %109, %110, %cst_37 {dimension_numbers = #tpu.dot_dimension_numbers<[1], [0], [0], [1], [0, 0, 1, 1], [], []>} : vector<16x32xf32>, vector<32x32xf32>, vector<16x32xf32> -> vector<16x32xf32>
    %112 = vector.extract_strided_slice %2 {offsets = [3, 0], sizes = [1, 32], strides = [1, 1]} : vector<16x128xf32> to vector<1x32xf32>
    %113 = vector.broadcast %112 : vector<1x32xf32> to vector<16x32xf32>
    %114 = arith.addf %111, %113 : vector<16x32xf32>
    %115 = arith.addf %0, %114 : vector<16x32xf32>
    %116 = vector.extract_strided_slice %2 {offsets = [4, 0], sizes = [1, 32], strides = [1, 1]} : vector<16x128xf32> to vector<1x32xf32>
    %117 = vector.extract_strided_slice %2 {offsets = [5, 0], sizes = [1, 32], strides = [1, 1]} : vector<16x128xf32> to vector<1x32xf32>
    %cst_38 = arith.constant dense<0.000000e+00> : vector<16xf32>
    %118 = vector.multi_reduction <add>, %115, %cst_38 [1] : vector<16x32xf32> to vector<16xf32>
    %119 = vector.shape_cast %118 : vector<16xf32> to vector<16x1xf32>
    %cst_39 = arith.constant 3.200000e+01 : f32
    %120 = vector.broadcast %cst_39 : f32 to vector<16x1xf32>
    %121 = arith.divf %119, %120 : vector<16x1xf32>
    %122 = vector.broadcast %121 : vector<16x1xf32> to vector<16x32xf32>
    %123 = arith.subf %115, %122 : vector<16x32xf32>
    %124 = arith.mulf %123, %123 : vector<16x32xf32>
    %cst_40 = arith.constant dense<0.000000e+00> : vector<16xf32>
    %125 = vector.multi_reduction <add>, %124, %cst_40 [1] : vector<16x32xf32> to vector<16xf32>
    %126 = vector.shape_cast %125 : vector<16xf32> to vector<16x1xf32>
    %cst_41 = arith.constant 3.200000e+01 : f32
    %127 = vector.broadcast %cst_41 : f32 to vector<16x1xf32>
    %128 = arith.divf %126, %127 : vector<16x1xf32>
    %129 = vector.broadcast %121 : vector<16x1xf32> to vector<16x32xf32>
    %130 = arith.subf %115, %129 : vector<16x32xf32>
    %cst_42 = arith.constant 9.99999974E-6 : f32
    %131 = vector.broadcast %cst_42 : f32 to vector<16x1xf32>
    %132 = arith.addf %128, %131 : vector<16x1xf32>
    %133 = math.rsqrt %132 : vector<16x1xf32>
    %134 = vector.broadcast %133 : vector<16x1xf32> to vector<16x32xf32>
    %135 = arith.mulf %130, %134 : vector<16x32xf32>
    %136 = vector.broadcast %116 : vector<1x32xf32> to vector<16x32xf32>
    %137 = arith.mulf %135, %136 : vector<16x32xf32>
    %138 = vector.broadcast %117 : vector<1x32xf32> to vector<16x32xf32>
    %139 = arith.addf %137, %138 : vector<16x32xf32>
    %c0_43 = arith.constant 0 : index
    %c128 = arith.constant 128 : index
    %140 = vector.load %arg2[%c0_43, %c128] : memref<32x320xf32, #tpu.memory_space<vmem>>, vector<32x32xf32>
    %cst_44 = arith.constant dense<0.000000e+00> : vector<16x32xf32>
    %141 = tpu.matmul %139, %140, %cst_44 {dimension_numbers = #tpu.dot_dimension_numbers<[1], [0], [0], [1], [0, 0, 1, 1], [], []>} : vector<16x32xf32>, vector<32x32xf32>, vector<16x32xf32> -> vector<16x32xf32>
    %142 = vector.extract_strided_slice %2 {offsets = [6, 0], sizes = [1, 32], strides = [1, 1]} : vector<16x128xf32> to vector<1x32xf32>
    %143 = vector.broadcast %142 : vector<1x32xf32> to vector<16x32xf32>
    %144 = arith.addf %141, %143 : vector<16x32xf32>
    %c0_45 = arith.constant 0 : index
    %c160 = arith.constant 160 : index
    %145 = vector.load %arg2[%c0_45, %c160] : memref<32x320xf32, #tpu.memory_space<vmem>>, vector<32x64xf32>
    %cst_46 = arith.constant dense<0.000000e+00> : vector<32x64xf32>
    %146 = tpu.matmul %1, %145, %cst_46 {dimension_numbers = #tpu.dot_dimension_numbers<[1], [0], [0], [1], [0, 0, 1, 1], [], []>} : vector<32x32xf32>, vector<32x64xf32>, vector<32x64xf32> -> vector<32x64xf32>
    %147 = vector.extract_strided_slice %2 {offsets = [7, 0], sizes = [1, 64], strides = [1, 1]} : vector<16x128xf32> to vector<1x64xf32>
    %148 = vector.broadcast %147 : vector<1x64xf32> to vector<32x64xf32>
    %149 = arith.addf %146, %148 : vector<32x64xf32>
    %150 = vector.extract_strided_slice %149 {offsets = [0, 0], sizes = [32, 32], strides = [1, 1]} : vector<32x64xf32> to vector<32x32xf32>
    %151 = vector.extract_strided_slice %149 {offsets = [0, 32], sizes = [32, 32], strides = [1, 1]} : vector<32x64xf32> to vector<32x32xf32>
    %152 = vector.extract_strided_slice %144 {offsets = [0, 0], sizes = [16, 8], strides = [1, 1]} : vector<16x32xf32> to vector<16x8xf32>
    %153 = vector.extract_strided_slice %150 {offsets = [0, 0], sizes = [32, 8], strides = [1, 1]} : vector<32x32xf32> to vector<32x8xf32>
    %cst_47 = arith.constant dense<0.000000e+00> : vector<16x32xf32>
    %154 = tpu.matmul %152, %153, %cst_47 {dimension_numbers = #tpu.dot_dimension_numbers<[1], [1], [0], [0], [0, 0, 1, 0], [], []>} : vector<16x8xf32>, vector<32x8xf32>, vector<16x32xf32> -> vector<16x32xf32>
    %cst_48 = arith.constant 0.353553385 : f32
    %155 = vector.broadcast %cst_48 : f32 to vector<16x32xf32>
    %156 = arith.mulf %154, %155 : vector<16x32xf32>
    %157 = arith.addf %156, %4 : vector<16x32xf32>
    %cst_49 = arith.constant dense<0xFF800000> : vector<16xf32>
    %158 = vector.multi_reduction <maximumf>, %157, %cst_49 [1] : vector<16x32xf32> to vector<16xf32>
    %159 = vector.shape_cast %158 : vector<16xf32> to vector<16x1xf32>
    %160 = vector.broadcast %159 : vector<16x1xf32> to vector<16x32xf32>
    %161 = arith.subf %157, %160 : vector<16x32xf32>
    %162 = math.exp %161 : vector<16x32xf32>
    %cst_50 = arith.constant dense<0.000000e+00> : vector<16xf32>
    %163 = vector.multi_reduction <add>, %162, %cst_50 [1] : vector<16x32xf32> to vector<16xf32>
    %164 = vector.shape_cast %163 : vector<16xf32> to vector<16x1xf32>
    %165 = tpu.reciprocal %164 {approx = true} : vector<16x1xf32> -> vector<16x1xf32>
    %166 = vector.broadcast %165 : vector<16x1xf32> to vector<16x32xf32>
    %167 = arith.mulf %162, %166 : vector<16x32xf32>
    %168 = vector.extract_strided_slice %151 {offsets = [0, 0], sizes = [32, 8], strides = [1, 1]} : vector<32x32xf32> to vector<32x8xf32>
    %cst_51 = arith.constant dense<0.000000e+00> : vector<16x8xf32>
    %169 = tpu.matmul %167, %168, %cst_51 {dimension_numbers = #tpu.dot_dimension_numbers<[1], [0], [0], [1], [0, 0, 1, 1], [], []>} : vector<16x32xf32>, vector<32x8xf32>, vector<16x8xf32> -> vector<16x8xf32>
    %170 = vector.extract_strided_slice %144 {offsets = [0, 8], sizes = [16, 8], strides = [1, 1]} : vector<16x32xf32> to vector<16x8xf32>
    %171 = vector.extract_strided_slice %150 {offsets = [0, 8], sizes = [32, 8], strides = [1, 1]} : vector<32x32xf32> to vector<32x8xf32>
    %cst_52 = arith.constant dense<0.000000e+00> : vector<16x32xf32>
    %172 = tpu.matmul %170, %171, %cst_52 {dimension_numbers = #tpu.dot_dimension_numbers<[1], [1], [0], [0], [0, 0, 1, 0], [], []>} : vector<16x8xf32>, vector<32x8xf32>, vector<16x32xf32> -> vector<16x32xf32>
    %cst_53 = arith.constant 0.353553385 : f32
    %173 = vector.broadcast %cst_53 : f32 to vector<16x32xf32>
    %174 = arith.mulf %172, %173 : vector<16x32xf32>
    %175 = arith.addf %174, %4 : vector<16x32xf32>
    %cst_54 = arith.constant dense<0xFF800000> : vector<16xf32>
    %176 = vector.multi_reduction <maximumf>, %175, %cst_54 [1] : vector<16x32xf32> to vector<16xf32>
    %177 = vector.shape_cast %176 : vector<16xf32> to vector<16x1xf32>
    %178 = vector.broadcast %177 : vector<16x1xf32> to vector<16x32xf32>
    %179 = arith.subf %175, %178 : vector<16x32xf32>
    %180 = math.exp %179 : vector<16x32xf32>
    %cst_55 = arith.constant dense<0.000000e+00> : vector<16xf32>
    %181 = vector.multi_reduction <add>, %180, %cst_55 [1] : vector<16x32xf32> to vector<16xf32>
    %182 = vector.shape_cast %181 : vector<16xf32> to vector<16x1xf32>
    %183 = tpu.reciprocal %182 {approx = true} : vector<16x1xf32> -> vector<16x1xf32>
    %184 = vector.broadcast %183 : vector<16x1xf32> to vector<16x32xf32>
    %185 = arith.mulf %180, %184 : vector<16x32xf32>
    %186 = vector.extract_strided_slice %151 {offsets = [0, 8], sizes = [32, 8], strides = [1, 1]} : vector<32x32xf32> to vector<32x8xf32>
    %cst_56 = arith.constant dense<0.000000e+00> : vector<16x8xf32>
    %187 = tpu.matmul %185, %186, %cst_56 {dimension_numbers = #tpu.dot_dimension_numbers<[1], [0], [0], [1], [0, 0, 1, 1], [], []>} : vector<16x32xf32>, vector<32x8xf32>, vector<16x8xf32> -> vector<16x8xf32>
    %188 = vector.extract_strided_slice %144 {offsets = [0, 16], sizes = [16, 8], strides = [1, 1]} : vector<16x32xf32> to vector<16x8xf32>
    %189 = vector.extract_strided_slice %150 {offsets = [0, 16], sizes = [32, 8], strides = [1, 1]} : vector<32x32xf32> to vector<32x8xf32>
    %cst_57 = arith.constant dense<0.000000e+00> : vector<16x32xf32>
    %190 = tpu.matmul %188, %189, %cst_57 {dimension_numbers = #tpu.dot_dimension_numbers<[1], [1], [0], [0], [0, 0, 1, 0], [], []>} : vector<16x8xf32>, vector<32x8xf32>, vector<16x32xf32> -> vector<16x32xf32>
    %cst_58 = arith.constant 0.353553385 : f32
    %191 = vector.broadcast %cst_58 : f32 to vector<16x32xf32>
    %192 = arith.mulf %190, %191 : vector<16x32xf32>
    %193 = arith.addf %192, %4 : vector<16x32xf32>
    %cst_59 = arith.constant dense<0xFF800000> : vector<16xf32>
    %194 = vector.multi_reduction <maximumf>, %193, %cst_59 [1] : vector<16x32xf32> to vector<16xf32>
    %195 = vector.shape_cast %194 : vector<16xf32> to vector<16x1xf32>
    %196 = vector.broadcast %195 : vector<16x1xf32> to vector<16x32xf32>
    %197 = arith.subf %193, %196 : vector<16x32xf32>
    %198 = math.exp %197 : vector<16x32xf32>
    %cst_60 = arith.constant dense<0.000000e+00> : vector<16xf32>
    %199 = vector.multi_reduction <add>, %198, %cst_60 [1] : vector<16x32xf32> to vector<16xf32>
    %200 = vector.shape_cast %199 : vector<16xf32> to vector<16x1xf32>
    %201 = tpu.reciprocal %200 {approx = true} : vector<16x1xf32> -> vector<16x1xf32>
    %202 = vector.broadcast %201 : vector<16x1xf32> to vector<16x32xf32>
    %203 = arith.mulf %198, %202 : vector<16x32xf32>
    %204 = vector.extract_strided_slice %151 {offsets = [0, 16], sizes = [32, 8], strides = [1, 1]} : vector<32x32xf32> to vector<32x8xf32>
    %cst_61 = arith.constant dense<0.000000e+00> : vector<16x8xf32>
    %205 = tpu.matmul %203, %204, %cst_61 {dimension_numbers = #tpu.dot_dimension_numbers<[1], [0], [0], [1], [0, 0, 1, 1], [], []>} : vector<16x32xf32>, vector<32x8xf32>, vector<16x8xf32> -> vector<16x8xf32>
    %206 = vector.extract_strided_slice %144 {offsets = [0, 24], sizes = [16, 8], strides = [1, 1]} : vector<16x32xf32> to vector<16x8xf32>
    %207 = vector.extract_strided_slice %150 {offsets = [0, 24], sizes = [32, 8], strides = [1, 1]} : vector<32x32xf32> to vector<32x8xf32>
    %cst_62 = arith.constant dense<0.000000e+00> : vector<16x32xf32>
    %208 = tpu.matmul %206, %207, %cst_62 {dimension_numbers = #tpu.dot_dimension_numbers<[1], [1], [0], [0], [0, 0, 1, 0], [], []>} : vector<16x8xf32>, vector<32x8xf32>, vector<16x32xf32> -> vector<16x32xf32>
    %cst_63 = arith.constant 0.353553385 : f32
    %209 = vector.broadcast %cst_63 : f32 to vector<16x32xf32>
    %210 = arith.mulf %208, %209 : vector<16x32xf32>
    %211 = arith.addf %210, %4 : vector<16x32xf32>
    %cst_64 = arith.constant dense<0xFF800000> : vector<16xf32>
    %212 = vector.multi_reduction <maximumf>, %211, %cst_64 [1] : vector<16x32xf32> to vector<16xf32>
    %213 = vector.shape_cast %212 : vector<16xf32> to vector<16x1xf32>
    %214 = vector.broadcast %213 : vector<16x1xf32> to vector<16x32xf32>
    %215 = arith.subf %211, %214 : vector<16x32xf32>
    %216 = math.exp %215 : vector<16x32xf32>
    %cst_65 = arith.constant dense<0.000000e+00> : vector<16xf32>
    %217 = vector.multi_reduction <add>, %216, %cst_65 [1] : vector<16x32xf32> to vector<16xf32>
    %218 = vector.shape_cast %217 : vector<16xf32> to vector<16x1xf32>
    %219 = tpu.reciprocal %218 {approx = true} : vector<16x1xf32> -> vector<16x1xf32>
    %220 = vector.broadcast %219 : vector<16x1xf32> to vector<16x32xf32>
    %221 = arith.mulf %216, %220 : vector<16x32xf32>
    %222 = vector.extract_strided_slice %151 {offsets = [0, 24], sizes = [32, 8], strides = [1, 1]} : vector<32x32xf32> to vector<32x8xf32>
    %cst_66 = arith.constant dense<0.000000e+00> : vector<16x8xf32>
    %223 = tpu.matmul %221, %222, %cst_66 {dimension_numbers = #tpu.dot_dimension_numbers<[1], [0], [0], [1], [0, 0, 1, 1], [], []>} : vector<16x32xf32>, vector<32x8xf32>, vector<16x8xf32> -> vector<16x8xf32>
    %224 = tpu.concatenate %169, %187, %205, %223 in 1 : vector<16x8xf32>, vector<16x8xf32>, vector<16x8xf32>, vector<16x8xf32> -> vector<16x32xf32>
    %c0_67 = arith.constant 0 : index
    %c224 = arith.constant 224 : index
    %225 = vector.load %arg2[%c0_67, %c224] : memref<32x320xf32, #tpu.memory_space<vmem>>, vector<32x32xf32>
    %cst_68 = arith.constant dense<0.000000e+00> : vector<16x32xf32>
    %226 = tpu.matmul %224, %225, %cst_68 {dimension_numbers = #tpu.dot_dimension_numbers<[1], [0], [0], [1], [0, 0, 1, 1], [], []>} : vector<16x32xf32>, vector<32x32xf32>, vector<16x32xf32> -> vector<16x32xf32>
    %227 = vector.extract_strided_slice %2 {offsets = [8, 0], sizes = [1, 32], strides = [1, 1]} : vector<16x128xf32> to vector<1x32xf32>
    %228 = vector.broadcast %227 : vector<1x32xf32> to vector<16x32xf32>
    %229 = arith.addf %226, %228 : vector<16x32xf32>
    %230 = arith.addf %115, %229 : vector<16x32xf32>
    %231 = vector.extract_strided_slice %2 {offsets = [9, 0], sizes = [1, 32], strides = [1, 1]} : vector<16x128xf32> to vector<1x32xf32>
    %232 = vector.extract_strided_slice %2 {offsets = [10, 0], sizes = [1, 32], strides = [1, 1]} : vector<16x128xf32> to vector<1x32xf32>
    %cst_69 = arith.constant dense<0.000000e+00> : vector<16xf32>
    %233 = vector.multi_reduction <add>, %230, %cst_69 [1] : vector<16x32xf32> to vector<16xf32>
    %234 = vector.shape_cast %233 : vector<16xf32> to vector<16x1xf32>
    %cst_70 = arith.constant 3.200000e+01 : f32
    %235 = vector.broadcast %cst_70 : f32 to vector<16x1xf32>
    %236 = arith.divf %234, %235 : vector<16x1xf32>
    %237 = vector.broadcast %236 : vector<16x1xf32> to vector<16x32xf32>
    %238 = arith.subf %230, %237 : vector<16x32xf32>
    %239 = arith.mulf %238, %238 : vector<16x32xf32>
    %cst_71 = arith.constant dense<0.000000e+00> : vector<16xf32>
    %240 = vector.multi_reduction <add>, %239, %cst_71 [1] : vector<16x32xf32> to vector<16xf32>
    %241 = vector.shape_cast %240 : vector<16xf32> to vector<16x1xf32>
    %cst_72 = arith.constant 3.200000e+01 : f32
    %242 = vector.broadcast %cst_72 : f32 to vector<16x1xf32>
    %243 = arith.divf %241, %242 : vector<16x1xf32>
    %244 = vector.broadcast %236 : vector<16x1xf32> to vector<16x32xf32>
    %245 = arith.subf %230, %244 : vector<16x32xf32>
    %cst_73 = arith.constant 9.99999974E-6 : f32
    %246 = vector.broadcast %cst_73 : f32 to vector<16x1xf32>
    %247 = arith.addf %243, %246 : vector<16x1xf32>
    %248 = math.rsqrt %247 : vector<16x1xf32>
    %249 = vector.broadcast %248 : vector<16x1xf32> to vector<16x32xf32>
    %250 = arith.mulf %245, %249 : vector<16x32xf32>
    %251 = vector.broadcast %231 : vector<1x32xf32> to vector<16x32xf32>
    %252 = arith.mulf %250, %251 : vector<16x32xf32>
    %253 = vector.broadcast %232 : vector<1x32xf32> to vector<16x32xf32>
    %254 = arith.addf %252, %253 : vector<16x32xf32>
    %c0_74 = arith.constant 0 : index
    %c256 = arith.constant 256 : index
    %255 = vector.load %arg2[%c0_74, %c256] : memref<32x320xf32, #tpu.memory_space<vmem>>, vector<32x64xf32>
    %cst_75 = arith.constant dense<0.000000e+00> : vector<16x64xf32>
    %256 = tpu.matmul %254, %255, %cst_75 {dimension_numbers = #tpu.dot_dimension_numbers<[1], [0], [0], [1], [0, 0, 1, 1], [], []>} : vector<16x32xf32>, vector<32x64xf32>, vector<16x64xf32> -> vector<16x64xf32>
    %257 = vector.extract_strided_slice %2 {offsets = [11, 0], sizes = [1, 64], strides = [1, 1]} : vector<16x128xf32> to vector<1x64xf32>
    %258 = vector.broadcast %257 : vector<1x64xf32> to vector<16x64xf32>
    %259 = arith.addf %256, %258 : vector<16x64xf32>
    %cst_76 = arith.constant 5.000000e-01 : f32
    %260 = vector.broadcast %cst_76 : f32 to vector<16x64xf32>
    %261 = arith.mulf %260, %259 : vector<16x64xf32>
    %cst_77 = arith.constant 0.707106769 : f32
    %262 = vector.broadcast %cst_77 : f32 to vector<16x64xf32>
    %263 = arith.mulf %259, %262 : vector<16x64xf32>
    %264 = math.erf %263 : vector<16x64xf32>
    %cst_78 = arith.constant 1.000000e+00 : f32
    %265 = vector.broadcast %cst_78 : f32 to vector<16x64xf32>
    %266 = arith.addf %265, %264 : vector<16x64xf32>
    %267 = arith.mulf %261, %266 : vector<16x64xf32>
    %c0_79 = arith.constant 0 : index
    %c0_80 = arith.constant 0 : index
    %268 = vector.load %arg3[%c0_79, %c0_80] : memref<64x32xf32, #tpu.memory_space<vmem>>, vector<64x32xf32>
    %cst_81 = arith.constant dense<0.000000e+00> : vector<16x32xf32>
    %269 = tpu.matmul %267, %268, %cst_81 {dimension_numbers = #tpu.dot_dimension_numbers<[1], [0], [0], [1], [0, 0, 1, 1], [], []>} : vector<16x64xf32>, vector<64x32xf32>, vector<16x32xf32> -> vector<16x32xf32>
    %270 = vector.extract_strided_slice %2 {offsets = [12, 0], sizes = [1, 32], strides = [1, 1]} : vector<16x128xf32> to vector<1x32xf32>
    %271 = vector.broadcast %270 : vector<1x32xf32> to vector<16x32xf32>
    %272 = arith.addf %269, %271 : vector<16x32xf32>
    %273 = arith.addf %230, %272 : vector<16x32xf32>
    %c0_82 = arith.constant 0 : index
    %c0_83 = arith.constant 0 : index
    %274 = vector.load %arg7[%c0_82, %c0_83] : memref<16x32xf32, #tpu.memory_space<vmem>>, vector<16x32xf32>
    tpu.vector_store %arg7[%c0_82, %c0_83], %273 {strides = array<i32>} : memref<16x32xf32, #tpu.memory_space<vmem>>, vector<16x32xf32>,
    return
  }
}

</mosaic_0001>

<bundles_post_ra>
// kernel: tpu_custom_call.1
= control target key start
LH: loop header
LB: loop body
LE: loop exit
PB: predicated region body
PF: predicated region fallthrough
CT: control target
= control target key end

     0   :  { %12 = vsyncpa [#allocation3], 0  ;;  %s4263_s0 = inlined_call_operand.hbm [shape: f32[16,32], index: 0, kind: input, shape index: {}]   ;;  %s4264_s1 = inlined_call_operand.hbm [shape: f32[32,32], index: 1, kind: input, shape index: {}]   ;;  %s4265_s2 = inlined_call_operand.vmem [shape: f32[32,320], index: 2, kind: input, shape index: {}]   ;;  %s4266_s3 = inlined_call_operand.vmem [shape: f32[64,32], index: 3, kind: input, shape index: {}]   ;;  %s4267_s4 = inlined_call_operand.hbm [shape: f32[16,128], index: 4, kind: input, shape index: {}]   ;;  %s4268_s5 = inlined_call_operand.vmem [shape: f32[16,16], index: 5, kind: input, shape index: {}]   ;;  %s4269_s6 = inlined_call_operand.hbm [shape: f32[16,32], index: 6, kind: input, shape index: {}]   ;;  %s4270_s7 = inlined_call_operand.hbm [shape: f32[16,32], index: 7, kind: output, shape index: {}]  }
   0x1   :  { %13 = vsyncpa [#allocation6], 0 }
   0x2   :  { %14 = vsyncpa [#allocation9], 0 }
   0x3   :  { %15 = vsyncpa [#allocation4], 0  ;;  %s3641_s24 = smov [#allocation5]   ;;  %s3642_s26 = smov [#allocation2]  }
   0x4   :  { %s33_s25 = sshll.u32 %s3641_s24, 4  ;;  %s21_s27 = sshll.u32 %s3642_s26, 4  ;;  %s34_s25 = int_to_ptr.vmem [resolvable:$true] %s33_s25  ;;  %s3702_s27 = int_to_ptr.vmem [resolvable:$true] %s21_s27 }
   0x5   :  { %s3523_s30 = scalar_lea.hbm %s4264_s1, 512 }
   0x6   :  { %p3524_p0 = scmp.ne.s32.totalorder %s4264_s1, %s3523_s30  ;;  %p3527_p1 = scmp.lt.u32.totalorder %s3523_s30, %s4264_s1 }
   0x8   :  { %p3529_p2 = pnand %p3527_p1, %p3524_p0 }
   0xa   :  { %3532 = shalt.err (!%p3529_p2)
}
   0xb   :  { %s3533_s12 = scalar_lea.vmem %s34_s25, 512  ;;  %p3538_p4 = scmp.lt.s32.totalorder %s34_s25, %s34_s25 }
   0xc   :  { %p3534_p3 = scmp.ne.s32.totalorder %s34_s25, %s3533_s12  ;;  %p3539_p5 = scmp.lt.s32.totalorder %s3533_s12, %s3533_s12 }
   0xe   :  { %p3540_p6 = por %p3539_p5, %p3538_p4 }
  0x10   :  { %p3541_p7 = pnand %p3540_p6, %p3534_p3 }
  0x12   :  { %3544 = shalt.err (!%p3541_p7)
}
  0x13   :  { %s3643_s13 = smov 128   ;;  %s3644_s14 = smov 8  }
  0x14   :  { %39 = dma.hbm_to_vmem [thread:$0]  %s4264_s1, 512, %s34_s25, [#allocation6], %s3643_s13, %s3643_s13, %s3644_s14  }
  0x15   :  { %s3545_s19 = scalar_lea.hbm %s4263_s0, 256 }
  0x16   :  { %p3546_p8 = scmp.ne.s32.totalorder %s4263_s0, %s3545_s19  ;;  %p3549_p9 = scmp.lt.u32.totalorder %s3545_s19, %s4263_s0 }
  0x18   :  { %p3551_p10 = pnand %p3549_p9, %p3546_p8 }
  0x1a   :  { %3554 = shalt.err (!%p3551_p10)
}
  0x1b   :  { %s3555_s24 = scalar_lea.vmem %s3702_s27, 256  ;;  %p3560_p12 = scmp.lt.s32.totalorder %s3702_s27, %s3702_s27 }
  0x1c   :  { %p3556_p11 = scmp.ne.s32.totalorder %s3702_s27, %s3555_s24  ;;  %p3561_p13 = scmp.lt.s32.totalorder %s3555_s24, %s3555_s24 }
  0x1e   :  { %p3562_p0 = por %p3561_p13, %p3560_p12 }
  0x20   :  { %p3563_p1 = pnand %p3562_p0, %p3556_p11 }
  0x22   :  { %3566 = shalt.err (!%p3563_p1)
}
  0x23   :  { %27 = dma.hbm_to_vmem [thread:$0]  %s4263_s0, 256, %s3702_s27, [#allocation3], %s3643_s13, %s3643_s13, %s3644_s14  }
  0x24   :  { %s3645_s26 = smov [#allocation7]   ;;  %s3646_s29 = smov [#allocation8]  }
  0x25   :  { %s49_s28 = sshll.u32 %s3645_s26, 4  ;;  %s63_s30 = sshll.u32 %s3646_s29, 4  ;;  %s50_s28 = int_to_ptr.vmem [resolvable:$true] %s49_s28  ;;  %s3739_s30 = int_to_ptr.vmem [resolvable:$true] %s63_s30 }
  0x26   :  { %s3567_s10 = scalar_lea.hbm %s4267_s4, 256 }
  0x27   :  { %p3568_p2 = scmp.ne.s32.totalorder %s4267_s4, %s3567_s10  ;;  %p3571_p3 = scmp.lt.u32.totalorder %s3567_s10, %s4267_s4 }
  0x29   :  { %p3573_p4 = pnand %p3571_p3, %p3568_p2 }
  0x2b   :  { %3576 = shalt.err (!%p3573_p4)
}
  0x2c   :  { %s3577_s0 = scalar_lea.vmem %s50_s28, 256  ;;  %p3582_p6 = scmp.lt.s32.totalorder %s50_s28, %s50_s28 }
  0x2d   :  { %p3578_p5 = scmp.ne.s32.totalorder %s50_s28, %s3577_s0  ;;  %p3583_p7 = scmp.lt.s32.totalorder %s3577_s0, %s3577_s0 }
  0x2f   :  { %p3584_p8 = por %p3583_p7, %p3582_p6 }
  0x31   :  { %p3585_p9 = pnand %p3584_p8, %p3578_p5 }
  0x33   :  { %3588 = shalt.err (!%p3585_p9)
}
  0x34   :  { %55 = dma.hbm_to_vmem [thread:$0]  %s4267_s4, 256, %s50_s28, [#allocation6], %s3643_s13, %s3643_s13, %s3644_s14  }
  0x35   :  { %s3589_s20 = scalar_lea.hbm %s4269_s6, 256 }
  0x36   :  { %p3590_p10 = scmp.ne.s32.totalorder %s4269_s6, %s3589_s20  ;;  %p3593_p11 = scmp.lt.u32.totalorder %s3589_s20, %s4269_s6 }
  0x38   :  { %p3595_p12 = pnand %p3593_p11, %p3590_p10 }
  0x3a   :  { %3598 = shalt.err (!%p3595_p12)
}
  0x3b   :  { %s3599_s1 = scalar_lea.vmem %s3739_s30, 256  ;;  %p3604_p0 = scmp.lt.s32.totalorder %s3739_s30, %s3739_s30 }
  0x3c   :  { %p3600_p13 = scmp.ne.s32.totalorder %s3739_s30, %s3599_s1  ;;  %p3605_p1 = scmp.lt.s32.totalorder %s3599_s1, %s3599_s1 }
  0x3e   :  { %p3606_p2 = por %p3605_p1, %p3604_p0 }
  0x40   :  { %p3607_p3 = pnand %p3606_p2, %p3600_p13 }
  0x42   :  { %3610 = shalt.err (!%p3607_p3)
}
  0x43   :  { %69 = dma.hbm_to_vmem [thread:$0]  %s4269_s6, 256, %s3739_s30, [#allocation9], %s3643_s13, %s3643_s13, %s3644_s14  }
  0x44   :  { %3633 = dma.done.wait [#allocation3], 256  }
  0x45   :  { %3634 = vsyncadd [#allocation3], 4294967040 }
  0x46   :  { %3635 = dma.done.wait [#allocation6], 768  }
  0x47   :  { %3636 = vsyncadd [#allocation6], 4294966528 }
  0x48   :  { %3637 = dma.done.wait [#allocation9], 256  }
  0x49   :  { %3638 = vsyncadd [#allocation9], 4294967040  ;;  %vm94_vm0 = vcmask 261120   ;;  %v3776_v0 = vld [vmem:[#allocation2] sm:$0xff]  ;;  %v3778_v1 = vld [vmem:[#allocation2 + $0x8] sm:$0xff]  ;;  %v122_v23 = vlaneseq  ;;  %vm229_vm1 = vcmask 64512  }
  0x4a   :  { %v95_v2 = vsel %vm94_vm0, %v3776_v0, 0.0  ;;  %v98_v3 = vsel %vm94_vm0, %v3778_v1, 0.0  ;;  %v3791_v14 = vld [vmem:[%s4265_s2] sm:$0xff]  ;;  %v3796_v15 = vld [vmem:[%s4265_s2 + $0x18] sm:$0xff]  ;;  %v3801_v16 = vld [vmem:[%s4265_s2 + $0x30] sm:$0xff]  ;;  %s3647_s11 = smov 88  }
  0x4b   :  { %96 = vadd.xlane.f32.xlu0 %v95_v2  ;;  %v3343_v17 = vpack.i.bf16 %v3796_v15, %v3791_v14  ;;  %v3098_v18 = vpack.c.bf16 %v3796_v15, %v3791_v14  ;;  %v3810_v19 = vld [vmem:[%s4265_s2 + $0x48] sm:$0xff]  ;;  %v3814_v27 = vshrl.u32 %v122_v23, 7  ;;  %v3817_v30 = vld [vmem:[#allocation7] sm:$0xff]  ;;  %s3648_s12 = smov 96   ;;  %s3649_s15 = smov 120   ;;  %vm3852_vm2 = vmpackc.low %vm229_vm1, %vm229_vm1  ;;  %vm317_vm3 = vcmask 130048  }
  0x4c   :  { %v3102_v20 = vpack.c.bf16 %v3810_v19, %v3801_v16  ;;  %v3871_v61 = vld [vmem:[%s4268_s5 + $0x8] sm:$0xff]  ;;  %v3876_v2 = vld [vmem:[%s4268_s5] sm:$0xff]  ;;  %s3650_s5 = smov 56   ;;  %s3651_s18 = smov 64   ;;  %vm1067_vm4 = vcmask 195584   ;;  %vm2561_vm5 = vcmask 523264  }
  0x4d   :  { %3099 = vmatprep.subr.bf16.mxu0 %v3098_v18  ;;  %v124_v29 = vsub.s32 0, %v3814_v27  ;;  %v130_v31 = vsub.s32 1, %v3814_v27  ;;  %v140_v42 = vsub.s32 2, %v3814_v27  ;;  %s3652_s19 = smov 80   ;;  %s3653_s20 = smov 112  }
  0x4e   :  { %3101 = vmatpush3.bf16.msra.mxu0 %v3098_v18  ;;  %s3654_s21 = smov 72   ;;  %s3655_s22 = smov 104  }
  0x4f   :  { %99 = vadd.xlane.f32.xlu0 %v98_v3  ;;  %3103 = vmatprep.subr.bf16.mxu0 %v3102_v20  ;;  %v125_v32 = vrot.slane %v3817_v30, %v124_v29  ;;  %v131_v35 = vrot.slane %v3817_v30, %v130_v31  ;;  %v141_v43 = vrot.slane %v3817_v30, %v140_v42  ;;  %s3656_s23 = smov 40   ;;  %s3657_s24 = smov 48  }
  0x50   :  { %s3658_s1 = smov 32   ;;  %s3659_s4 = smov 16  }
  0x51   :  { %s3660_s25 = smov 24  }
  0x52   :  { %3105 = vmatpush3.bf16.msra.mxu0 %v3102_v20 }
  0xd8   :  { %v97_v4 = vpop.xlane.xlu0 %96 }
  0xd9   :  { %v102_v5 = vmul.f32 0.03125, %v97_v4 }
  0xdb   :  { %v104_v6 = vsub.f32 %v3776_v0, %v102_v5 }
  0xdc   :  { %v100_v7 = vpop.xlane.xlu0 %99 }
  0xdd   :  { %v103_v8 = vmul.f32 0.03125, %v100_v7  ;;  %v106_v9 = vmul.f32 %v104_v6, %v104_v6 }
  0xdf   :  { %v105_v10 = vsub.f32 %v3778_v1, %v103_v8  ;;  %v108_v11 = vsel %vm94_vm0, %v106_v9, 0.0 }
  0xe0   :  { %109 = vadd.xlane.f32.xlu1 %v108_v11 }
  0xe1   :  { %v107_v12 = vmul.f32 %v105_v10, %v105_v10 }
  0xe3   :  { %v111_v13 = vsel %vm94_vm0, %v107_v12, 0.0 }
  0xe4   :  { %112 = vadd.xlane.f32.xlu1 %v111_v13 }
 0x16d   :  { %v110_v21 = vpop.xlane.xlu1 %109 }
 0x16e   :  { %v114_v22 = vmul.f32 0.03125, %v110_v21 }
 0x170   :  { %v116_v24 = vadd.f32 1e-05, %v114_v22 }
 0x171   :  { %v113_v25 = vpop.xlane.xlu1 %112 }
 0x172   :  { %3443 = vrsqrt.f32 %v116_v24  ;;  %v115_v26 = vmul.f32 0.03125, %v113_v25 }
 0x174   :  { %v117_v28 = vadd.f32 1e-05, %v115_v26 }
 0x176   :  { %3445 = vrsqrt.f32 %v117_v28 }
 0x17c   :  { %v3444_v33 = vpop.eup %3443 }
 0x17d   :  { %v120_v34 = vmul.f32 %v3444_v33, %v104_v6 }
 0x17f   :  { %v126_v36 = vmul.f32 %v125_v32, %v120_v34 }
 0x180   :  { %v3446_v37 = vpop.eup %3445 }
 0x181   :  { %v121_v38 = vmul.f32 %v3446_v37, %v105_v10  ;;  %v132_v39 = vadd.f32 %v131_v35, %v126_v36 }
 0x183   :  { %v127_v40 = vmul.f32 %v125_v32, %v121_v38  ;;  %2874 = vmatprep.mubr.msk.f32.mxu0 %vm94_vm0, %v132_v39 }
 0x185   :  { %v133_v41 = vadd.f32 %v131_v35, %v127_v40 }
 0x187   :  { %2875 = vmatmul.mubr.msk.f32.vlgmr.msra.gmra.mrb[0].mxu0 %vm94_vm0, %v133_v41 }
 0x25a   :  { %v2876_v44 = vpop.f32.mrb[0].mxu0 }
 0x25b   :  { %v3832_v45 = vadd.f32 %v2876_v44, %v141_v43  ;;  %v214_v46 = vpop.f32.mrb[1].mxu0 }
 0x25c   :  { %v3834_v47 = vadd.f32 %v214_v46, %v141_v43 }
 0x25e   :  { %2881 = vmatprep.mubr.msk.f32.mxu1 %vm229_vm1, %v3834_v47  ;;  %v3840_v48 = vpack.i.bf16 %v3832_v45, %v3834_v47 }
 0x260   :  { %3309 = vrot.lane.b32.xlu1 %v3840_v48, %s3647_s11  ;;  %3304 = vrot.lane.b32.xlu0 %v3840_v48, %s3648_s12 }
 0x264   :  { %427 = vrot.lane.b32.xlu1 %v3834_v47, %s3649_s15 }
 0x268   :  { %429 = vrot.lane.b32.xlu1 %v3832_v45, %s3649_s15 }
 0x2d2   :  { %v3310_v49 = vpop.permute.xlu1 %3309  ;;  %v3305_v50 = vpop.permute.xlu0 %3304 }
 0x2d3   :  { %v3312_v51 = vunpack.i.h.bf16 %v3310_v49  ;;  %v3311_v52 = vunpack.i.l.bf16 %v3310_v49  ;;  %v3307_v53 = vunpack.i.h.bf16 %v3305_v50  ;;  %v3306_v54 = vunpack.i.l.bf16 %v3305_v50 }
 0x2d5   :  { %v3106_v56 = vpack.c.bf16 %v3307_v53, %v3306_v54  ;;  %v3116_v57 = vpack.c.bf16 %v3312_v51, %v3311_v52 }
 0x2d6   :  { %v428_v58 = vpop.permute.xlu1 %427 }
 0x2d7   :  { %3108 = vmatprep.subr.msk.bf16.mxu1 %vm3852_vm2, %v3106_v56 }
 0x2d8   :  { %3111 = vmatpush3.bf16.xpose.msk.msra.mxu1 %vm3852_vm2, %v3106_v56 }
 0x2d9   :  { %3118 = vmatprep.subr.msk.bf16.mxu1 %vm3852_vm2, %v3116_v57 }
 0x2da   :  { %v430_v59 = vpop.permute.xlu1 %429 }
 0x2df   :  { %2882 = vmatmul.mubr.msk.f32.vlgmr.msra.gmra.mrb[0].mxu1 %vm229_vm1, %v3832_v45 }
 0x2e0   :  { %3121 = vmatpush3.bf16.xpose.msk.msra.mxu1 %vm3852_vm2, %v3116_v57  ;;  %2895 = vmatprep.mubr.msk.f32.mxu1 %vm229_vm1, %v428_v58 }
 0x2e7   :  { %2896 = vmatmul.mubr.msk.f32.vlgmr.msra.gmra.mrb[2].mxu1 %vm229_vm1, %v430_v59 }
 0x3b2   :  { %v2883_v60 = vpop.f32.mrb[0].mxu1 }
 0x3b3   :  { %v314_v62 = vmul.f32 0.35355338, %v2883_v60  ;;  %v304_v63 = vpop.f32.mrb[1].mxu1 }
 0x3b4   :  { %v313_v3 = vmul.f32 0.35355338, %v304_v63 }
 0x3b5   :  { %v316_v4 = vadd.f32 %v314_v62, %v3871_v61 }
 0x3b6   :  { %v315_v5 = vadd.f32 %v313_v3, %v3876_v2 }
 0x3b7   :  { %v321_v6 = vsel %vm317_vm3, %v316_v4, -inf }
 0x3b8   :  { %322 = vmax.xlane.f32.xlu1 %v321_v6  ;;  %v318_v7 = vsel %vm317_vm3, %v315_v5, -inf }
 0x3b9   :  { %319 = vmax.xlane.f32.xlu0 %v318_v7 }
 0x3ba   :  { %v2897_v8 = vpop.f32.mrb[2].mxu1 }
 0x3bb   :  { %v509_v9 = vpop.f32.mrb[3].mxu1  ;;  %v519_v10 = vmul.f32 0.35355338, %v2897_v8 }
 0x3bc   :  { %v518_v11 = vmul.f32 0.35355338, %v509_v9 }
 0x3bd   :  { %v521_v18 = vadd.f32 %v519_v10, %v3871_v61 }
 0x3be   :  { %v520_v12 = vadd.f32 %v518_v11, %v3876_v2 }
 0x3bf   :  { %v525_v20 = vsel %vm317_vm3, %v521_v18, -inf }
 0x3c0   :  { %v522_v13 = vsel %vm317_vm3, %v520_v12, -inf }
 0x3c1   :  { %523 = vmax.xlane.f32.xlu0 %v522_v13 }
 0x3c5   :  { %526 = vmax.xlane.f32.xlu0 %v525_v20 }
 0x445   :  { %v323_v21 = vpop.xlane.xlu1 %322 }
 0x446   :  { %v325_v22 = vsub.f32 %v316_v4, %v323_v21  ;;  %v320_v23 = vpop.xlane.xlu0 %319 }
 0x447   :  { %v324_v24 = vsub.f32 %v315_v5, %v320_v23 }
 0x448   :  { %v328_v25 = vmul.f32 1.442695, %v325_v22 }
 0x449   :  { %v326_v26 = vmul.f32 1.442695, %v324_v24 }
 0x44a   :  { %3447 = vpow2.f32 %v328_v25 }
 0x44b   :  { %3449 = vpow2.f32 %v326_v26 }
 0x44e   :  { %v524_v28 = vpop.xlane.xlu0 %523 }
 0x44f   :  { %v528_v32 = vsub.f32 %v520_v12, %v524_v28 }
 0x451   :  { %v530_v33 = vmul.f32 1.442695, %v528_v32 }
 0x452   :  { %v527_v34 = vpop.xlane.xlu0 %526 }
 0x453   :  { %3451 = vpow2.f32 %v530_v33  ;;  %v529_v35 = vsub.f32 %v521_v18, %v527_v34 }
 0x454   :  { %v3448_v36 = vpop.eup %3447 }
 0x455   :  { %v3450_v37 = vpop.eup %3449  ;;  %v532_v38 = vmul.f32 1.442695, %v529_v35  ;;  %v333_v39 = vsel %vm317_vm3, %v3448_v36, 0.0 }
 0x456   :  { %334 = vadd.xlane.f32.xlu1 %v333_v39  ;;  %v330_v40 = vsel %vm317_vm3, %v3450_v37, 0.0 }
 0x457   :  { %3453 = vpow2.f32 %v532_v38  ;;  %331 = vadd.xlane.f32.xlu0 %v330_v40 }
 0x45d   :  { %v3452_v41 = vpop.eup %3451 }
 0x45e   :  { %v534_v43 = vsel %vm317_vm3, %v3452_v41, 0.0 }
 0x45f   :  { %535 = vadd.xlane.f32.xlu0 %v534_v43 }
 0x461   :  { %v3454_v44 = vpop.eup %3453 }
 0x462   :  { %v537_v46 = vsel %vm317_vm3, %v3454_v44, 0.0 }
 0x463   :  { %538 = vadd.xlane.f32.xlu1 %v537_v46 }
 0x474   :  { %3319 = vrot.lane.b32.xlu1 %v3840_v48, %s3650_s5 }
 0x475   :  { %3314 = vrot.lane.b32.xlu0 %v3840_v48, %s3651_s18 }
 0x478   :  { %3324 = vrot.lane.b32.xlu1 %v3840_v48, %s3652_s19 }
 0x479   :  { %631 = vrot.lane.b32.xlu0 %v3834_v47, %s3653_s20 }
 0x47c   :  { %3329 = vrot.lane.b32.xlu1 %v3840_v48, %s3654_s21 }
 0x47d   :  { %835 = vrot.lane.b32.xlu0 %v3834_v47, %s3655_s22 }
 0x480   :  { %633 = vrot.lane.b32.xlu1 %v3832_v45, %s3653_s20 }
 0x484   :  { %837 = vrot.lane.b32.xlu1 %v3832_v45, %s3655_s22 }
 0x4e3   :  { %v335_v50 = vpop.xlane.xlu1 %334 }
 0x4e4   :  { %v332_v49 = vpop.xlane.xlu0 %331 }
 0x4e5   :  { %3455 = vrcp.f32 %v332_v49 }
 0x4e6   :  { %3457 = vrcp.f32 %v335_v50 }
 0x4ec   :  { %v536_v51 = vpop.xlane.xlu0 %535 }
 0x4ed   :  { %3459 = vrcp.f32 %v536_v51 }
 0x4ef   :  { %v3456_v52 = vpop.eup %3455 }
 0x4f0   :  { %v539_v53 = vpop.xlane.xlu1 %538  ;;  %v3315_v54 = vpop.permute.xlu0 %3314  ;;  %v338_v56 = vmul.f32 %v3456_v52, %v3450_v37 }
 0x4f1   :  { %3461 = vrcp.f32 %v539_v53  ;;  %v3317_v57 = vunpack.i.h.bf16 %v3315_v54  ;;  %v3316_v58 = vunpack.i.l.bf16 %v3315_v54  ;;  %v3458_v59 = vpop.eup %3457 }
 0x4f2   :  { %2888 = vmatprep.mubr.msk.f32.mxu0 %vm317_vm3, %v338_v56  ;;  %v339_v4 = vmul.f32 %v3458_v59, %v3448_v36 }
 0x4f3   :  { %v3112_v47 = vpack.c.bf16 %v3317_v57, %v3316_v58 }
 0x4f4   :  { %v3320_v60 = vpop.permute.xlu1 %3319  ;;  %v632_v62 = vpop.permute.xlu0 %631 }
 0x4f5   :  { %v3322_v45 = vunpack.i.h.bf16 %v3320_v60  ;;  %v3321_v63 = vunpack.i.l.bf16 %v3320_v60  ;;  %3113 = vmatprep.subr.bf16.mxu0 %v3112_v47 }
 0x4f6   :  { %3115 = vmatpush3.bf16.msra.mxu0 %v3112_v47 }
 0x4f7   :  { %v3460_v3 = vpop.eup %3459  ;;  %v3122_v5 = vpack.c.bf16 %v3322_v45, %v3321_v63 }
 0x4f8   :  { %v3325_v6 = vpop.permute.xlu1 %3324  ;;  %v836_v7 = vpop.permute.xlu0 %835  ;;  %v542_v8 = vmul.f32 %v3460_v3, %v3452_v41 }
 0x4f9   :  { %v3327_v9 = vunpack.i.h.bf16 %v3325_v6  ;;  %v3326_v10 = vunpack.i.l.bf16 %v3325_v6  ;;  %2889 = vmatmul.mubr.msk.f32.vlgmr.msra.gmra.mrb[2].mxu0 %vm317_vm3, %v339_v4  ;;  %3123 = vmatprep.subr.bf16.mxu0 %v3122_v5 }
 0x4fa   :  { %2923 = vmatprep.mubr.msk.f32.mxu1 %vm229_vm1, %v836_v7  ;;  %3125 = vmatpush3.bf16.msra.mxu0 %v3122_v5 }
 0x4fb   :  { %v3462_v11 = vpop.eup %3461  ;;  %v3126_v12 = vpack.c.bf16 %v3327_v9, %v3326_v10  ;;  %2902 = vmatprep.mubr.msk.f32.mxu0 %vm317_vm3, %v542_v8  ;;  %v3348_v10 = vpack.i.bf16 %v3810_v19, %v3801_v16 }
 0x4fc   :  { %v543_v13 = vmul.f32 %v3462_v11, %v3454_v44  ;;  %v3330_v18 = vpop.permute.xlu1 %3329 }
 0x4fd   :  { %v3332_v20 = vunpack.i.h.bf16 %v3330_v18  ;;  %v3331_v21 = vunpack.i.l.bf16 %v3330_v18  ;;  %3128 = vmatprep.subr.msk.bf16.mxu0 %vm3852_vm2, %v3126_v12 }
 0x4fe   :  { %2903 = vmatmul.mubr.msk.f32.vlgmr.msra.gmra.mrb[4].mxu0 %vm317_vm3, %v543_v13 }
 0x4ff   :  { %v3136_v22 = vpack.c.bf16 %v3332_v20, %v3331_v21  ;;  %2909 = vmatprep.mubr.msk.f32.mxu0 %vm229_vm1, %v632_v62 }
 0x500   :  { %v634_v23 = vpop.permute.xlu1 %633 }
 0x501   :  { %3138 = vmatprep.subr.msk.bf16.mxu1 %vm3852_vm2, %v3136_v22 }
 0x502   :  { %3141 = vmatpush3.bf16.xpose.msk.msra.mxu1 %vm3852_vm2, %v3136_v22 }
 0x503   :  { %3131 = vmatpush3.bf16.xpose.msk.msra.mxu0 %vm3852_vm2, %v3126_v12 }
 0x504   :  { %v838_v24 = vpop.permute.xlu1 %837 }
 0x509   :  { %2924 = vmatmul.mubr.msk.f32.vlgmr.msra.gmra.mrb[4].mxu1 %vm229_vm1, %v838_v24 }
 0x50a   :  { %2910 = vmatmul.mubr.msk.f32.vlgmr.msra.gmra.mrb[6].mxu0 %vm229_vm1, %v634_v23 }
 0x5cc   :  { %v3920_v25 = vpop.f32.mrb[2].mxu0 }
 0x5cd   :  { %v3922_v26 = vpop.f32.mrb[3].mxu0 }
 0x5d1   :  { %v2904_v28 = vpop.f32.mrb[4].mxu0 }
 0x5d2   :  { %v622_v32 = vpop.f32.mrb[5].mxu0 }
 0x5dc   :  { %v2925_v33 = vpop.f32.mrb[4].mxu1 }
 0x5dd   :  { %v2911_v34 = vpop.f32.mrb[6].mxu0  ;;  %v917_v35 = vpop.f32.mrb[5].mxu1  ;;  %v927_v44 = vmul.f32 0.35355338, %v2925_v33 }
 0x5de   :  { %v723_v36 = vmul.f32 0.35355338, %v2911_v34  ;;  %v713_v37 = vpop.f32.mrb[7].mxu0  ;;  %v926_v38 = vmul.f32 0.35355338, %v917_v35 }
 0x5df   :  { %v722_v39 = vmul.f32 0.35355338, %v713_v37  ;;  %v929_v51 = vadd.f32 %v927_v44, %v3871_v61 }
 0x5e0   :  { %v725_v40 = vadd.f32 %v723_v36, %v3871_v61  ;;  %v928_v49 = vadd.f32 %v926_v38, %v3876_v2 }
 0x5e1   :  { %v724_v41 = vadd.f32 %v722_v39, %v3876_v2  ;;  %v933_v52 = vsel %vm317_vm3, %v929_v51, -inf }
 0x5e2   :  { %v729_v43 = vsel %vm317_vm3, %v725_v40, -inf  ;;  %v930_v50 = vsel %vm317_vm3, %v928_v49, -inf }
 0x5e3   :  { %730 = vmax.xlane.f32.xlu1 %v729_v43  ;;  %v726_v46 = vsel %vm317_vm3, %v724_v41, -inf }
 0x5e4   :  { %727 = vmax.xlane.f32.xlu0 %v726_v46 }
 0x5e8   :  { %931 = vmax.xlane.f32.xlu0 %v930_v50 }
 0x5ec   :  { %934 = vmax.xlane.f32.xlu0 %v933_v52 }
 0x670   :  { %v731_v56 = vpop.xlane.xlu1 %730 }
 0x671   :  { %v728_v53 = vpop.xlane.xlu0 %727  ;;  %v733_v47 = vsub.f32 %v725_v40, %v731_v56 }
 0x672   :  { %v732_v54 = vsub.f32 %v724_v41, %v728_v53 }
 0x673   :  { %v736_v45 = vmul.f32 1.442695, %v733_v47 }
 0x674   :  { %v734_v59 = vmul.f32 1.442695, %v732_v54 }
 0x675   :  { %v932_v57 = vpop.xlane.xlu0 %931 }
 0x676   :  { %v936_v58 = vsub.f32 %v928_v49, %v932_v57 }
 0x678   :  { %v938_v60 = vmul.f32 1.442695, %v936_v58 }
 0x679   :  { %v935_v62 = vpop.xlane.xlu0 %934 }
 0x67a   :  { %3463 = vpow2.f32 %v938_v60  ;;  %v937_v2 = vsub.f32 %v929_v51, %v935_v62 }
 0x67b   :  { %3465 = vpow2.f32 %v734_v59 }
 0x67c   :  { %v940_v63 = vmul.f32 1.442695, %v937_v2 }
 0x67e   :  { %3467 = vpow2.f32 %v940_v63  ;;  %v1072_v63 = vsub.s32 3, %v3814_v27 }
 0x67f   :  { %3469 = vpow2.f32 %v736_v45 }
 0x684   :  { %v3464_v61 = vpop.eup %3463 }
 0x685   :  { %v942_v3 = vsel %vm317_vm3, %v3464_v61, 0.0  ;;  %v3466_v4 = vpop.eup %3465 }
 0x686   :  { %943 = vadd.xlane.f32.xlu0 %v942_v3  ;;  %v738_v6 = vsel %vm317_vm3, %v3466_v4, 0.0 }
 0x688   :  { %v3468_v5 = vpop.eup %3467 }
 0x689   :  { %v945_v7 = vsel %vm317_vm3, %v3468_v5, 0.0  ;;  %v3470_v8 = vpop.eup %3469 }
 0x68a   :  { %739 = vadd.xlane.f32.xlu0 %v738_v6  ;;  %946 = vadd.xlane.f32.xlu1 %v945_v7  ;;  %v741_v9 = vsel %vm317_vm3, %v3470_v8, 0.0 }
 0x68e   :  { %742 = vadd.xlane.f32.xlu1 %v741_v9  ;;  %v1213_v9 = vld [vmem:[%s4265_s2 + $0x38] sm:$0xff] }
 0x69f   :  { %3339 = vrot.lane.b32.xlu1 %v3840_v48, %s3656_s23 }
 0x6a0   :  { %3334 = vrot.lane.b32.xlu0 %v3840_v48, %s3657_s24 }
 0x6a3   :  { %3344 = vrot.lane.b32.xlu1 %v3343_v17, %s3658_s1 }
 0x6a4   :  { %1041 = vrot.lane.b32.xlu0 %v622_v32, %s3644_s14 }
 0x6a7   :  { %3349 = vrot.lane.b32.xlu1 %v3348_v10, %s3658_s1 }
 0x6ab   :  { %1043 = vrot.lane.b32.xlu1 %v2904_v28, %s3644_s14 }
 0x713   :  { %v944_v11 = vpop.xlane.xlu0 %943 }
 0x717   :  { %v947_v12 = vpop.xlane.xlu1 %946  ;;  %v740_v13 = vpop.xlane.xlu0 %739 }
 0x718   :  { %3471 = vrcp.f32 %v740_v13 }
 0x719   :  { %3473 = vrcp.f32 %v944_v11 }
 0x71b   :  { %v743_v48 = vpop.xlane.xlu1 %742  ;;  %v3335_v18 = vpop.permute.xlu0 %3334 }
 0x71c   :  { %3475 = vrcp.f32 %v743_v48  ;;  %v3337_v20 = vunpack.i.h.bf16 %v3335_v18  ;;  %v3336_v14 = vunpack.i.l.bf16 %v3335_v18 }
 0x71d   :  { %3477 = vrcp.f32 %v947_v12 }
 0x71e   :  { %v3132_v15 = vpack.c.bf16 %v3337_v20, %v3336_v14 }
 0x71f   :  { %v3340_v17 = vpop.permute.xlu1 %3339  ;;  %v1042_v53 = vpop.permute.xlu0 %1041 }
 0x720   :  { %v3342_v16 = vunpack.i.h.bf16 %v3340_v17  ;;  %v3341_v19 = vunpack.i.l.bf16 %v3340_v17  ;;  %3133 = vmatprep.subr.bf16.mxu0 %v3132_v15  ;;  %v1063_v57 = vsel %vm229_vm1, %v3922_v26, %v1042_v53  ;;  %v1073_v26 = vrot.slane %v3817_v30, %v1072_v63 }
 0x721   :  { %3135 = vmatpush3.bf16.msra.mxu0 %v3132_v15  ;;  %v1207_v53 = vsub.s32 5, %v3814_v27 }
 0x722   :  { %v3142_v21 = vpack.c.bf16 %v3342_v16, %v3341_v19  ;;  %v3472_v22 = vpop.eup %3471  ;;  %v1211_v16 = vld [vmem:[%s4265_s2 + $0x8] sm:$0xff]  ;;  %v1212_v19 = vld [vmem:[%s4265_s2 + $0x20] sm:$0xff] }
 0x723   :  { %v3345_v23 = vpop.permute.xlu1 %3344  ;;  %v746_v32 = vmul.f32 %v3472_v22, %v3466_v4  ;;  %v3474_v33 = vpop.eup %3473  ;;  %v3154_v22 = vpack.c.bf16 %v1212_v19, %v1211_v16 }
 0x724   :  { %v3347_v24 = vunpack.i.h.bf16 %v3345_v23  ;;  %v3346_v28 = vunpack.i.l.bf16 %v3345_v23  ;;  %3143 = vmatprep.subr.bf16.mxu0 %v3142_v21  ;;  %v950_v41 = vmul.f32 %v3474_v33, %v3464_v61  ;;  %v84_v23 = vld [vmem:[#allocation5] sm:$0xff] }
 0x725   :  { %2916 = vmatprep.mubr.msk.f32.mxu0 %vm317_vm3, %v746_v32  ;;  %3155 = vmatprep.subr.bf16.mxu1 %v3154_v22 }
 0x726   :  { %v3476_v34 = vpop.eup %3475  ;;  %v3146_v36 = vpack.c.bf16 %v3347_v24, %v3346_v28  ;;  %3157 = vmatpush3.bf16.msra.mxu1 %v3154_v22 }
 0x727   :  { %v747_v35 = vmul.f32 %v3476_v34, %v3470_v8  ;;  %v3350_v37 = vpop.permute.xlu1 %3349  ;;  %v3478_v38 = vpop.eup %3477 }
 0x728   :  { %v3352_v39 = vunpack.i.h.bf16 %v3350_v37  ;;  %v3351_v40 = vunpack.i.l.bf16 %v3350_v37  ;;  %v951_v43 = vmul.f32 %v3478_v38, %v3468_v5 }
 0x729   :  { %2917 = vmatmul.mubr.msk.f32.vlgmr.msra.gmra.mrb[8].mxu0 %vm317_vm3, %v747_v35 }
 0x72a   :  { %3145 = vmatpush3.bf16.msra.mxu0 %v3142_v21  ;;  %2930 = vmatprep.mubr.msk.f32.mxu0 %vm317_vm3, %v950_v41  ;;  %v3150_v44 = vpack.c.bf16 %v3352_v39, %v3351_v40  ;;  %v3999_v21 = vpack.i.bf16 %v1212_v19, %v1211_v16  ;;  %v4039_v19 = vld [vmem:[#allocation8 + $0x8] sm:$0xff] }
 0x72b   :  { %3147 = vmatprep.subr.bf16.mxu0 %v3146_v36  ;;  %v1044_v52 = vpop.permute.xlu1 %1043 }
 0x72c   :  { %v1064_v47 = vsel %vm229_vm1, %v3920_v25, %v1044_v52 }
 0x72d   :  { %2931 = vmatmul.mubr.msk.f32.vlgmr.msra.gmra.mrb[10].mxu0 %vm317_vm3, %v951_v43 }
 0x72e   :  { %3149 = vmatpush3.bf16.msra.mxu0 %v3146_v36 }
 0x72f   :  { %3151 = vmatprep.subr.bf16.mxu0 %v3150_v44 }
 0x732   :  { %3153 = vmatpush3.bf16.msra.mxu0 %v3150_v44 }
 0x7fc   :  { %v2918_v46 = vpop.f32.mrb[8].mxu0 }
 0x7fd   :  { %1051 = vrot.lane.b32.xlu1 %v2918_v46, %s3659_s4  ;;  %v826_v49 = vpop.f32.mrb[9].mxu0 }
 0x7fe   :  { %1049 = vrot.lane.b32.xlu0 %v826_v49, %s3659_s4  ;;  %v1201_v49 = vsub.s32 4, %v3814_v27 }
 0x800   :  { %v2932_v50 = vpop.f32.mrb[10].mxu0  ;;  %v1202_v52 = vrot.slane %v3817_v30, %v1201_v49 }
 0x801   :  { %1059 = vrot.lane.b32.xlu1 %v2932_v50, %s3660_s25  ;;  %v1030_v51 = vpop.f32.mrb[11].mxu0 }
 0x802   :  { %1057 = vrot.lane.b32.xlu0 %v1030_v51, %s3660_s25 }
 0x86f   :  { %v1052_v54 = vpop.permute.xlu1 %1051 }
 0x870   :  { %v1050_v56 = vpop.permute.xlu0 %1049  ;;  %v1066_v62 = vsel %vm317_vm3, %v1064_v47, %v1052_v54  ;;  %v85_v54 = vld [vmem:[#allocation5 + $0x8] sm:$0xff] }
 0x871   :  { %v1065_v59 = vsel %vm317_vm3, %v1063_v57, %v1050_v56  ;;  %v86_v57 = vld [vmem:[#allocation5 + $0x10] sm:$0xff] }
 0x873   :  { %v1060_v58 = vpop.permute.xlu1 %1059 }
 0x874   :  { %v1058_v60 = vpop.permute.xlu0 %1057  ;;  %v1069_v45 = vsel %vm1067_vm4, %v1066_v62, %v1060_v58  ;;  %v87_v62 = vld [vmem:[#allocation5 + $0x18] sm:$0xff] }
 0x875   :  { %v1068_v2 = vsel %vm1067_vm4, %v1065_v59, %v1058_v60  ;;  %v1208_v59 = vrot.slane %v3817_v30, %v1207_v53 }
 0x876   :  { %2941 = vmatprep.mubr.msk.f32.mxu0 %vm94_vm0, %v1068_v2 }
 0x877   :  { %2942 = vmatmul.mubr.msk.f32.vlgmr.msra.gmra.mrb[12].mxu0 %vm94_vm0, %v1069_v45 }
 0x878   :  { %2963 = vmatprep.mubr.msk.f32.mxu0 %vm94_vm0, %v84_v23 }
 0x94a   :  { %v2943_v25 = vpop.f32.mrb[12].mxu0 }
 0x94b   :  { %v1168_v61 = vadd.f32 %v2943_v25, %v1073_v26  ;;  %v1162_v3 = vpop.f32.mrb[13].mxu0 }
 0x94c   :  { %v1163_v4 = vadd.f32 %v1162_v3, %v1073_v26  ;;  %v1302_v26 = vsub.s32 7, %v3814_v27 }
 0x94d   :  { %v3970_v5 = vadd.f32 %v1168_v61, %v3778_v1  ;;  %v1214_v1 = vld [vmem:[%s4265_s2 + $0x50] sm:$0xff]  ;;  %v1217_v61 = vsub.s32 6, %v3814_v27 }
 0x94e   :  { %v3973_v6 = vadd.f32 %v1163_v4, %v3776_v0  ;;  %v3985_v10 = vpack.i.bf16 %v1214_v1, %v1213_v9  ;;  %v3158_v24 = vpack.c.bf16 %v1214_v1, %v1213_v9  ;;  %v1303_v25 = vrot.slane %v3817_v30, %v1302_v26 }
 0x94f   :  { %v1176_v7 = vsel %vm94_vm0, %v3970_v5, 0.0  ;;  %v1218_v9 = vrot.slane %v3817_v30, %v1217_v61 }
 0x950   :  { %1177 = vadd.xlane.f32.xlu1 %v1176_v7  ;;  %v1173_v8 = vsel %vm94_vm0, %v3973_v6, 0.0  ;;  %3159 = vmatprep.subr.bf16.mxu1 %v3158_v24 }
 0x951   :  { %1174 = vadd.xlane.f32.xlu0 %v1173_v8  ;;  %3161 = vmatpush3.bf16.msra.mxu1 %v3158_v24  ;;  %v4041_v24 = vld [vmem:[#allocation8] sm:$0xff] }
 0x961   :  { %3359 = vrot.lane.b32.xlu1 %v3985_v10, %s3648_s12 }
 0x9dd   :  { %v1178_v0 = vpop.xlane.xlu1 %1177 }
 0x9de   :  { %v1180_v11 = vmul.f32 0.03125, %v1178_v0  ;;  %v1175_v12 = vpop.xlane.xlu0 %1174 }
 0x9df   :  { %v1179_v13 = vmul.f32 0.03125, %v1175_v12 }
 0x9e0   :  { %v1182_v48 = vsub.f32 %v3970_v5, %v1180_v11 }
 0x9e1   :  { %v1181_v18 = vsub.f32 %v3973_v6, %v1179_v13  ;;  %v3360_v35 = vpop.permute.xlu1 %3359 }
 0x9e2   :  { %v1184_v20 = vmul.f32 %v1182_v48, %v1182_v48  ;;  %v3362_v38 = vunpack.i.h.bf16 %v3360_v35  ;;  %v3361_v39 = vunpack.i.l.bf16 %v3360_v35 }
 0x9e3   :  { %v1183_v15 = vmul.f32 %v1181_v18, %v1181_v18 }
 0x9e4   :  { %v1188_v14 = vsel %vm94_vm0, %v1184_v20, 0.0  ;;  %v3166_v46 = vpack.c.bf16 %v3362_v38, %v3361_v39 }
 0x9e5   :  { %1189 = vadd.xlane.f32.xlu0 %v1188_v14  ;;  %v1185_v17 = vsel %vm94_vm0, %v1183_v15, 0.0 }
 0x9e9   :  { %1186 = vadd.xlane.f32.xlu0 %v1185_v17 }
 0x9ff   :  { %3354 = vrot.lane.b32.xlu0 %v3999_v21, %s3648_s12 }
 0xa72   :  { %v1190_v28 = vpop.xlane.xlu0 %1189 }
 0xa73   :  { %v1192_v32 = vmul.f32 0.03125, %v1190_v28 }
 0xa75   :  { %v1194_v33 = vadd.f32 1e-05, %v1192_v32 }
 0xa76   :  { %v1187_v34 = vpop.xlane.xlu0 %1186 }
 0xa77   :  { %3479 = vrsqrt.f32 %v1194_v33  ;;  %v1191_v36 = vmul.f32 0.03125, %v1187_v34 }
 0xa79   :  { %v1193_v37 = vadd.f32 1e-05, %v1191_v36 }
 0xa7a   :  { %v3355_v40 = vpop.permute.xlu0 %3354 }
 0xa7b   :  { %3481 = vrsqrt.f32 %v1193_v37  ;;  %v3357_v41 = vunpack.i.h.bf16 %v3355_v40  ;;  %v3356_v43 = vunpack.i.l.bf16 %v3355_v40 }
 0xa7d   :  { %v3162_v44 = vpack.c.bf16 %v3357_v41, %v3356_v43 }
 0xa7f   :  { %3163 = vmatprep.subr.bf16.mxu0 %v3162_v44 }
 0xa80   :  { %3165 = vmatpush3.bf16.msra.mxu0 %v3162_v44 }
 0xa81   :  { %v3480_v50 = vpop.eup %3479  ;;  %3167 = vmatprep.subr.bf16.mxu0 %v3166_v46 }
 0xa82   :  { %v1198_v51 = vmul.f32 %v3480_v50, %v1182_v48 }
 0xa84   :  { %3169 = vmatpush3.bf16.msra.mxu0 %v3166_v46  ;;  %v1204_v47 = vmul.f32 %v1202_v52, %v1198_v51 }
 0xa85   :  { %v3482_v56 = vpop.eup %3481 }
 0xa86   :  { %v1197_v58 = vmul.f32 %v3482_v56, %v1181_v18  ;;  %v1210_v45 = vadd.f32 %v1208_v59, %v1204_v47 }
 0xa87   :  { %2964 = vmatmul.mubr.msk.f32.vlgmr.msra.gmra.mrb[14].mxu0 %vm94_vm0, %v85_v54 }
 0xa88   :  { %v1203_v60 = vmul.f32 %v1202_v52, %v1197_v58  ;;  %2966 = vmatprep.mubr.msk.f32.mxu0 %vm94_vm0, %v86_v57 }
 0xa8a   :  { %v1209_v2 = vadd.f32 %v1208_v59, %v1203_v60 }
 0xa8b   :  { %2967 = vmatmul.mubr.msk.f32.gmra.mrb[16].mxu0 %vm94_vm0, %v87_v62 }
 0xa8c   :  { %2952 = vmatprep.mubr.msk.f32.mxu1 %vm94_vm0, %v1209_v2 }
 0xa8d   :  { %2953 = vmatmul.mubr.msk.f32.vlgmr.msra.gmra.mrb[6].mxu1 %vm94_vm0, %v1210_v45 }
 0xb5a   :  { %v2965_v3 = vpop.f32.mrb[14].mxu0 }
 0xb5b   :  { %v1404_v4 = vadd.f32 %v2965_v3, %v1303_v25  ;;  %v1398_v7 = vpop.f32.mrb[15].mxu0 }
 0xb5c   :  { %v1399_v8 = vadd.f32 %v1398_v7, %v1303_v25 }
 0xb5e   :  { %v3170_v1 = vpack.c.bf16 %v1404_v4, %v1399_v8  ;;  %v2968_v0 = vpop.f32.mrb[16].mxu0  ;;  %v4019_v11 = vpack.i.bf16 %v1404_v4, %v1399_v8 }
 0xb5f   :  { %v1414_v12 = vadd.f32 %v2968_v0, %v1303_v25  ;;  %v1408_v13 = vpop.f32.mrb[17].mxu0 }
 0xb60   :  { %v2954_v48 = vpop.f32.mrb[6].mxu1  ;;  %3172 = vmatprep.subr.msk.bf16.mxu1 %vm3852_vm2, %v3170_v1  ;;  %v1409_v18 = vadd.f32 %v1408_v13, %v1303_v25 }
 0xb61   :  { %v1291_v20 = vpop.f32.mrb[7].mxu1  ;;  %3175 = vmatpush3.bf16.xpose.msk.msra.mxu1 %vm3852_vm2, %v3170_v1  ;;  %v4035_v30 = vadd.f32 %v2954_v48, %v1218_v9 }
 0xb62   :  { %v4025_v14 = vadd.f32 %v1291_v20, %v1218_v9  ;;  %v3176_v15 = vpack.c.bf16 %v1414_v12, %v1409_v18  ;;  %v4027_v17 = vpack.i.bf16 %v1414_v12, %v1409_v18 }
 0xb64   :  { %2977 = vmatprep.mubr.msk.f32.mxu1 %vm229_vm1, %v4025_v14  ;;  %3178 = vmatprep.subr.msk.bf16.mxu1 %vm3852_vm2, %v3176_v15 }
 0xb69   :  { %3181 = vmatpush3.bf16.xpose.msk.msra.mxu1 %vm3852_vm2, %v3176_v15 }
 0xb70   :  { %2978 = vmatmul.mubr.msk.f32.vlgmr.msra.gmra.mrb[8].mxu1 %vm229_vm1, %v4035_v30 }
 0xc43   :  { %v2979_v16 = vpop.f32.mrb[8].mxu1 }
 0xc44   :  { %v1511_v22 = vmul.f32 0.35355338, %v2979_v16  ;;  %v1501_v23 = vpop.f32.mrb[9].mxu1 }
 0xc45   :  { %v1510_v28 = vmul.f32 0.35355338, %v1501_v23 }
 0xc46   :  { %v1513_v32 = vadd.f32 %v1511_v22, %v4039_v19 }
 0xc47   :  { %v1512_v33 = vadd.f32 %v1510_v28, %v4041_v24 }
 0xc48   :  { %v1517_v34 = vsel %vm94_vm0, %v1513_v32, -inf }
 0xc49   :  { %1518 = vmax.xlane.f32.xlu0 %v1517_v34  ;;  %v1514_v35 = vsel %vm94_vm0, %v1512_v33, -inf }
 0xc4a   :  { %1515 = vmax.xlane.f32.xlu1 %v1514_v35 }
 0xcd6   :  { %v1519_v36 = vpop.xlane.xlu0 %1518 }
 0xcd7   :  { %v1521_v37 = vsub.f32 %v1513_v32, %v1519_v36  ;;  %v1516_v38 = vpop.xlane.xlu1 %1515 }
 0xcd8   :  { %v1520_v39 = vsub.f32 %v1512_v33, %v1516_v38 }
 0xcd9   :  { %v1524_v40 = vmul.f32 1.442695, %v1521_v37 }
 0xcda   :  { %v1522_v41 = vmul.f32 1.442695, %v1520_v39 }
 0xcdb   :  { %3483 = vpow2.f32 %v1524_v40 }
 0xcdc   :  { %3485 = vpow2.f32 %v1522_v41 }
 0xce5   :  { %v3484_v43 = vpop.eup %3483 }
 0xce6   :  { %v3486_v44 = vpop.eup %3485  ;;  %v1529_v46 = vsel %vm94_vm0, %v3484_v43, 0.0 }
 0xce7   :  { %1530 = vadd.xlane.f32.xlu1 %v1529_v46  ;;  %v1526_v50 = vsel %vm94_vm0, %v3486_v44, 0.0 }
 0xce8   :  { %1527 = vadd.xlane.f32.xlu0 %v1526_v50 }
 0xcf8   :  { %3369 = vrot.lane.b32.xlu1 %v4027_v17, %s3648_s12 }
 0xcfc   :  { %3374 = vrot.lane.b32.xlu1 %v4019_v11, %s3649_s15 }
 0xcfe   :  { %3364 = vrot.lane.b32.xlu0 %v4019_v11, %s3648_s12 }
 0xd00   :  { %3379 = vrot.lane.b32.xlu1 %v4027_v17, %s3649_s15 }
 0xd02   :  { %1629 = vrot.lane.b32.xlu0 %v4025_v14, %s3649_s15 }
 0xd04   :  { %1631 = vrot.lane.b32.xlu1 %v4035_v30, %s3649_s15 }
 0xd74   :  { %v1531_v51 = vpop.xlane.xlu1 %1530 }
 0xd75   :  { %v1528_v52 = vpop.xlane.xlu0 %1527 }
 0xd76   :  { %3487 = vrcp.f32 %v1528_v52 }
 0xd77   :  { %3489 = vrcp.f32 %v1531_v51 }
 0xd78   :  { %v3370_v53 = vpop.permute.xlu1 %3369 }
 0xd79   :  { %v3365_v54 = vpop.permute.xlu0 %3364  ;;  %v3372_v56 = vunpack.i.h.bf16 %v3370_v53  ;;  %v3371_v57 = vunpack.i.l.bf16 %v3370_v53 }
 0xd7a   :  { %v3367_v58 = vunpack.i.h.bf16 %v3365_v54  ;;  %v3366_v47 = vunpack.i.l.bf16 %v3365_v54 }
 0xd7b   :  { %v3186_v62 = vpack.c.bf16 %v3372_v56, %v3371_v57 }
 0xd7c   :  { %v3182_v59 = vpack.c.bf16 %v3367_v58, %v3366_v47  ;;  %v3375_v60 = vpop.permute.xlu1 %3374 }
 0xd7d   :  { %v3377_v2 = vunpack.i.h.bf16 %v3375_v60  ;;  %v3376_v45 = vunpack.i.l.bf16 %v3375_v60  ;;  %v1630_v8 = vpop.permute.xlu0 %1629 }
 0xd7e   :  { %3183 = vmatprep.subr.bf16.mxu0 %v3182_v59 }
 0xd7f   :  { %3185 = vmatpush3.bf16.msra.mxu0 %v3182_v59  ;;  %v3190_v3 = vpack.c.bf16 %v3377_v2, %v3376_v45 }
 0xd80   :  { %v3488_v26 = vpop.eup %3487  ;;  %3187 = vmatprep.subr.bf16.mxu0 %v3186_v62  ;;  %v3380_v7 = vpop.permute.xlu1 %3379 }
 0xd81   :  { %v3490_v25 = vpop.eup %3489  ;;  %v1534_v61 = vmul.f32 %v3488_v26, %v3486_v44  ;;  %v3382_v9 = vunpack.i.h.bf16 %v3380_v7  ;;  %v3381_v1 = vunpack.i.l.bf16 %v3380_v7 }
 0xd82   :  { %v1535_v4 = vmul.f32 %v3490_v25, %v3484_v43 }
 0xd83   :  { %3189 = vmatpush3.bf16.msra.mxu0 %v3186_v62  ;;  %2988 = vmatprep.mubr.msk.f32.mxu0 %vm94_vm0, %v1534_v61  ;;  %v3196_v0 = vpack.c.bf16 %v3382_v9, %v3381_v1 }
 0xd84   :  { %3192 = vmatprep.subr.msk.bf16.mxu0 %vm3852_vm2, %v3190_v3  ;;  %v1632_v12 = vpop.permute.xlu1 %1631 }
 0xd86   :  { %2989 = vmatmul.mubr.msk.f32.vlgmr.msra.gmra.mrb[18].mxu0 %vm94_vm0, %v1535_v4 }
 0xd87   :  { %2999 = vmatprep.mubr.msk.f32.mxu0 %vm229_vm1, %v1630_v8 }
 0xd8c   :  { %3195 = vmatpush3.bf16.xpose.msk.msra.mxu0 %vm3852_vm2, %v3190_v3 }
 0xd8d   :  { %3198 = vmatprep.subr.msk.bf16.mxu0 %vm3852_vm2, %v3196_v0 }
 0xd94   :  { %3201 = vmatpush3.bf16.xpose.msk.msra.mxu0 %vm3852_vm2, %v3196_v0 }
 0xd9b   :  { %3000 = vmatmul.mubr.msk.f32.vlgmr.msra.gmra.mrb[20].mxu0 %vm229_vm1, %v1632_v12 }
 0xe59   :  { %v4073_v13 = vpop.f32.mrb[18].mxu0 }
 0xe5a   :  { %v4075_v48 = vpop.f32.mrb[19].mxu0 }
 0xe6e   :  { %v3001_v18 = vpop.f32.mrb[20].mxu0 }
 0xe6f   :  { %v1729_v20 = vmul.f32 0.35355338, %v3001_v18  ;;  %v1719_v15 = vpop.f32.mrb[21].mxu0 }
 0xe70   :  { %v1728_v16 = vmul.f32 0.35355338, %v1719_v15 }
 0xe71   :  { %v1731_v22 = vadd.f32 %v1729_v20, %v4039_v19 }
 0xe72   :  { %v1730_v23 = vadd.f32 %v1728_v16, %v4041_v24 }
 0xe73   :  { %v1735_v28 = vsel %vm94_vm0, %v1731_v22, -inf }
 0xe74   :  { %1736 = vmax.xlane.f32.xlu1 %v1735_v28  ;;  %v1732_v32 = vsel %vm94_vm0, %v1730_v23, -inf }
 0xe75   :  { %1733 = vmax.xlane.f32.xlu0 %v1732_v32 }
 0xe85   :  { %3389 = vrot.lane.b32.xlu1 %v4027_v17, %s3647_s11 }
 0xe89   :  { %3394 = vrot.lane.b32.xlu1 %v4019_v11, %s3653_s20 }
 0xe8d   :  { %3399 = vrot.lane.b32.xlu1 %v4027_v17, %s3653_s20 }
 0xe91   :  { %1849 = vrot.lane.b32.xlu1 %v4035_v30, %s3653_s20 }
 0xf01   :  { %v1737_v33 = vpop.xlane.xlu1 %1736 }
 0xf02   :  { %v1739_v34 = vsub.f32 %v1731_v22, %v1737_v33  ;;  %v1734_v35 = vpop.xlane.xlu0 %1733 }
 0xf03   :  { %v1738_v36 = vsub.f32 %v1730_v23, %v1734_v35 }
 0xf04   :  { %v1742_v37 = vmul.f32 1.442695, %v1739_v34 }
 0xf05   :  { %v1740_v38 = vmul.f32 1.442695, %v1738_v36  ;;  %v3390_v46 = vpop.permute.xlu1 %3389 }
 0xf06   :  { %3491 = vpow2.f32 %v1742_v37  ;;  %v3392_v52 = vunpack.i.h.bf16 %v3390_v46  ;;  %v3391_v53 = vunpack.i.l.bf16 %v3390_v46 }
 0xf07   :  { %3493 = vpow2.f32 %v1740_v38 }
 0xf08   :  { %v3206_v47 = vpack.c.bf16 %v3392_v52, %v3391_v53 }
 0xf09   :  { %v3395_v57 = vpop.permute.xlu1 %3394 }
 0xf0a   :  { %v3397_v59 = vunpack.i.h.bf16 %v3395_v57  ;;  %v3396_v60 = vunpack.i.l.bf16 %v3395_v57 }
 0xf0c   :  { %v3210_v26 = vpack.c.bf16 %v3397_v59, %v3396_v60 }
 0xf0d   :  { %v3400_v25 = vpop.permute.xlu1 %3399 }
 0xf0e   :  { %v3402_v4 = vunpack.i.h.bf16 %v3400_v25  ;;  %v3401_v7 = vunpack.i.l.bf16 %v3400_v25 }
 0xf10   :  { %v3492_v39 = vpop.eup %3491  ;;  %v3216_v8 = vpack.c.bf16 %v3402_v4, %v3401_v7 }
 0xf11   :  { %v1747_v40 = vsel %vm94_vm0, %v3492_v39, 0.0  ;;  %v3494_v41 = vpop.eup %3493  ;;  %v1850_v9 = vpop.permute.xlu1 %1849 }
 0xf12   :  { %1748 = vadd.xlane.f32.xlu0 %v1747_v40  ;;  %v1744_v43 = vsel %vm94_vm0, %v3494_v41, 0.0 }
 0xf16   :  { %1745 = vadd.xlane.f32.xlu0 %v1744_v43 }
 0xf2c   :  { %3384 = vrot.lane.b32.xlu0 %v4019_v11, %s3647_s11 }
 0xf30   :  { %1847 = vrot.lane.b32.xlu0 %v4025_v14, %s3653_s20 }
 0xf9f   :  { %v1749_v44 = vpop.xlane.xlu0 %1748 }
 0xfa3   :  { %v1746_v50 = vpop.xlane.xlu0 %1745 }
 0xfa4   :  { %3495 = vrcp.f32 %v1746_v50 }
 0xfa5   :  { %3497 = vrcp.f32 %v1749_v44 }
 0xfa7   :  { %v3385_v51 = vpop.permute.xlu0 %3384 }
 0xfa8   :  { %v3387_v54 = vunpack.i.h.bf16 %v3385_v51  ;;  %v3386_v56 = vunpack.i.l.bf16 %v3385_v51 }
 0xfaa   :  { %v3202_v58 = vpack.c.bf16 %v3387_v54, %v3386_v56 }
 0xfab   :  { %v1848_v3 = vpop.permute.xlu0 %1847 }
 0xfac   :  { %3203 = vmatprep.subr.bf16.mxu1 %v3202_v58 }
 0xfad   :  { %3205 = vmatpush3.bf16.msra.mxu1 %v3202_v58 }
 0xfae   :  { %v3496_v62 = vpop.eup %3495  ;;  %3207 = vmatprep.subr.bf16.mxu1 %v3206_v47 }
 0xfaf   :  { %v3498_v2 = vpop.eup %3497  ;;  %v1752_v45 = vmul.f32 %v3496_v62, %v3494_v41 }
 0xfb0   :  { %v1753_v61 = vmul.f32 %v3498_v2, %v3492_v39 }
 0xfb1   :  { %3209 = vmatpush3.bf16.msra.mxu1 %v3206_v47  ;;  %3010 = vmatprep.mubr.msk.f32.mxu1 %vm94_vm0, %v1752_v45 }
 0xfb2   :  { %3212 = vmatprep.subr.msk.bf16.mxu1 %vm3852_vm2, %v3210_v26 }
 0xfb4   :  { %3011 = vmatmul.mubr.msk.f32.vlgmr.msra.gmra.mrb[10].mxu1 %vm94_vm0, %v1753_v61 }
 0xfb5   :  { %3021 = vmatprep.mubr.msk.f32.mxu1 %vm229_vm1, %v1848_v3 }
 0xfba   :  { %3215 = vmatpush3.bf16.xpose.msk.msra.mxu1 %vm3852_vm2, %v3210_v26 }
 0xfbb   :  { %3218 = vmatprep.subr.msk.bf16.mxu1 %vm3852_vm2, %v3216_v8 }
 0xfc2   :  { %3221 = vmatpush3.bf16.xpose.msk.msra.mxu1 %vm3852_vm2, %v3216_v8 }
 0xfc9   :  { %3022 = vmatmul.mubr.msk.f32.vlgmr.msra.gmra.mrb[12].mxu1 %vm229_vm1, %v1850_v9 }
0x1087   :  { %v4107_v1 = vpop.f32.mrb[10].mxu1 }
0x1088   :  { %v4109_v0 = vpop.f32.mrb[11].mxu1 }
0x109c   :  { %v3023_v12 = vpop.f32.mrb[12].mxu1 }
0x109d   :  { %v1947_v18 = vmul.f32 0.35355338, %v3023_v12  ;;  %v1937_v20 = vpop.f32.mrb[13].mxu1 }
0x109e   :  { %v1946_v15 = vmul.f32 0.35355338, %v1937_v20 }
0x109f   :  { %v1949_v16 = vadd.f32 %v1947_v18, %v4039_v19 }
0x10a0   :  { %v1948_v22 = vadd.f32 %v1946_v15, %v4041_v24 }
0x10a1   :  { %v1953_v23 = vsel %vm94_vm0, %v1949_v16, -inf }
0x10a2   :  { %1954 = vmax.xlane.f32.xlu1 %v1953_v23  ;;  %v1950_v28 = vsel %vm94_vm0, %v1948_v22, -inf }
0x10a3   :  { %1951 = vmax.xlane.f32.xlu0 %v1950_v28 }
0x10b3   :  { %3409 = vrot.lane.b32.xlu1 %v4027_v17, %s3652_s19 }
0x10b7   :  { %3414 = vrot.lane.b32.xlu1 %v4019_v11, %s3655_s22 }
0x10bb   :  { %3419 = vrot.lane.b32.xlu1 %v4027_v17, %s3655_s22 }
0x10bf   :  { %2067 = vrot.lane.b32.xlu1 %v4035_v30, %s3655_s22 }
0x112f   :  { %v1955_v32 = vpop.xlane.xlu1 %1954 }
0x1130   :  { %v1957_v33 = vsub.f32 %v1949_v16, %v1955_v32  ;;  %v1952_v34 = vpop.xlane.xlu0 %1951 }
0x1131   :  { %v1956_v35 = vsub.f32 %v1948_v22, %v1952_v34 }
0x1132   :  { %v1960_v36 = vmul.f32 1.442695, %v1957_v33 }
0x1133   :  { %v1958_v37 = vmul.f32 1.442695, %v1956_v35  ;;  %v3410_v43 = vpop.permute.xlu1 %3409 }
0x1134   :  { %3499 = vpow2.f32 %v1960_v36  ;;  %v3412_v50 = vunpack.i.h.bf16 %v3410_v43  ;;  %v3411_v51 = vunpack.i.l.bf16 %v3410_v43 }
0x1135   :  { %3501 = vpow2.f32 %v1958_v37 }
0x1136   :  { %v3226_v57 = vpack.c.bf16 %v3412_v50, %v3411_v51 }
0x1137   :  { %v3415_v54 = vpop.permute.xlu1 %3414 }
0x1138   :  { %v3417_v58 = vunpack.i.h.bf16 %v3415_v54  ;;  %v3416_v47 = vunpack.i.l.bf16 %v3415_v54 }
0x113a   :  { %v3230_v62 = vpack.c.bf16 %v3417_v58, %v3416_v47 }
0x113b   :  { %v3420_v2 = vpop.permute.xlu1 %3419 }
0x113c   :  { %v3422_v25 = vunpack.i.h.bf16 %v3420_v2  ;;  %v3421_v61 = vunpack.i.l.bf16 %v3420_v2 }
0x113e   :  { %v3500_v38 = vpop.eup %3499  ;;  %v3236_v3 = vpack.c.bf16 %v3422_v25, %v3421_v61 }
0x113f   :  { %v1965_v39 = vsel %vm94_vm0, %v3500_v38, 0.0  ;;  %v3502_v40 = vpop.eup %3501  ;;  %v2068_v4 = vpop.permute.xlu1 %2067 }
0x1140   :  { %1966 = vadd.xlane.f32.xlu0 %v1965_v39  ;;  %v1962_v41 = vsel %vm94_vm0, %v3502_v40, 0.0 }
0x1144   :  { %1963 = vadd.xlane.f32.xlu0 %v1962_v41 }
0x115a   :  { %3404 = vrot.lane.b32.xlu0 %v4019_v11, %s3652_s19 }
0x115e   :  { %2065 = vrot.lane.b32.xlu0 %v4025_v14, %s3655_s22 }
0x11cd   :  { %v1967_v30 = vpop.xlane.xlu0 %1966 }
0x11d1   :  { %v1964_v44 = vpop.xlane.xlu0 %1963 }
0x11d2   :  { %3503 = vrcp.f32 %v1964_v44 }
0x11d3   :  { %3505 = vrcp.f32 %v1967_v30 }
0x11d5   :  { %v3405_v46 = vpop.permute.xlu0 %3404 }
0x11d6   :  { %v3407_v52 = vunpack.i.h.bf16 %v3405_v46  ;;  %v3406_v53 = vunpack.i.l.bf16 %v3405_v46 }
0x11d8   :  { %v3222_v56 = vpack.c.bf16 %v3407_v52, %v3406_v53 }
0x11d9   :  { %v2066_v26 = vpop.permute.xlu0 %2065 }
0x11da   :  { %3223 = vmatprep.subr.bf16.mxu0 %v3222_v56 }
0x11db   :  { %3225 = vmatpush3.bf16.msra.mxu0 %v3222_v56 }
0x11dc   :  { %v3504_v59 = vpop.eup %3503  ;;  %3227 = vmatprep.subr.bf16.mxu0 %v3226_v57 }
0x11dd   :  { %v3506_v14 = vpop.eup %3505  ;;  %v1970_v60 = vmul.f32 %v3504_v59, %v3502_v40 }
0x11de   :  { %v1971_v45 = vmul.f32 %v3506_v14, %v3500_v38 }
0x11df   :  { %3229 = vmatpush3.bf16.msra.mxu0 %v3226_v57  ;;  %3032 = vmatprep.mubr.msk.f32.mxu0 %vm94_vm0, %v1970_v60 }
0x11e0   :  { %3232 = vmatprep.subr.msk.bf16.mxu0 %vm3852_vm2, %v3230_v62 }
0x11e2   :  { %3033 = vmatmul.mubr.msk.f32.vlgmr.msra.gmra.mrb[22].mxu0 %vm94_vm0, %v1971_v45 }
0x11e3   :  { %3043 = vmatprep.mubr.msk.f32.mxu0 %vm229_vm1, %v2066_v26 }
0x11e8   :  { %3235 = vmatpush3.bf16.xpose.msk.msra.mxu0 %vm3852_vm2, %v3230_v62 }
0x11e9   :  { %3238 = vmatprep.subr.msk.bf16.mxu0 %vm3852_vm2, %v3236_v3 }
0x11f0   :  { %3241 = vmatpush3.bf16.xpose.msk.msra.mxu0 %vm3852_vm2, %v3236_v3 }
0x11f7   :  { %3044 = vmatmul.mubr.msk.f32.vlgmr.msra.gmra.mrb[24].mxu0 %vm229_vm1, %v2068_v4 }
0x12b5   :  { %v3034_v7 = vpop.f32.mrb[22].mxu0 }
0x12b6   :  { %v2056_v8 = vpop.f32.mrb[23].mxu0 }
0x12ca   :  { %v3045_v9 = vpop.f32.mrb[24].mxu0 }
0x12cb   :  { %v2165_v12 = vmul.f32 0.35355338, %v3045_v9  ;;  %v2155_v18 = vpop.f32.mrb[25].mxu0  ;;  %v4175_v9 = vld [vmem:[#allocation7 + $0x8] sm:$0xff] }
0x12cc   :  { %v2164_v20 = vmul.f32 0.35355338, %v2155_v18 }
0x12cd   :  { %v2167_v15 = vadd.f32 %v2165_v12, %v4039_v19 }
0x12ce   :  { %v2166_v16 = vadd.f32 %v2164_v20, %v4041_v24 }
0x12cf   :  { %v2171_v22 = vsel %vm94_vm0, %v2167_v15, -inf }
0x12d0   :  { %2172 = vmax.xlane.f32.xlu1 %v2171_v22  ;;  %v2168_v23 = vsel %vm94_vm0, %v2166_v16, -inf }
0x12d1   :  { %2169 = vmax.xlane.f32.xlu0 %v2168_v23 }
0x12e1   :  { %3429 = vrot.lane.b32.xlu1 %v4027_v17, %s3654_s21 }
0x12e5   :  { %3434 = vrot.lane.b32.xlu1 %v3999_v21, %s3658_s1 }
0x12e9   :  { %3439 = vrot.lane.b32.xlu1 %v3985_v10, %s3658_s1 }
0x12ed   :  { %2287 = vrot.lane.b32.xlu1 %v4107_v1, %s3644_s14 }
0x12f1   :  { %2295 = vrot.lane.b32.xlu1 %v3034_v7, %s3659_s4 }
0x135d   :  { %v2173_v55 = vpop.xlane.xlu1 %2172 }
0x135e   :  { %v2175_v19 = vsub.f32 %v2167_v15, %v2173_v55  ;;  %v2170_v24 = vpop.xlane.xlu0 %2169 }
0x135f   :  { %v2174_v28 = vsub.f32 %v2166_v16, %v2170_v24 }
0x1360   :  { %v2178_v32 = vmul.f32 1.442695, %v2175_v19 }
0x1361   :  { %v2176_v33 = vmul.f32 1.442695, %v2174_v28  ;;  %v3430_v35 = vpop.permute.xlu1 %3429 }
0x1362   :  { %3507 = vpow2.f32 %v2178_v32  ;;  %v3432_v39 = vunpack.i.h.bf16 %v3430_v35  ;;  %v3431_v40 = vunpack.i.l.bf16 %v3430_v35  ;;  %v2453_v35 = vld [vmem:[%s4265_s2 + $0x58] sm:$0xff] }
0x1363   :  { %3509 = vpow2.f32 %v2176_v33 }
0x1365   :  { %v3435_v37 = vpop.permute.xlu1 %3434 }
0x1366   :  { %v3437_v43 = vunpack.i.h.bf16 %v3435_v37  ;;  %v3436_v44 = vunpack.i.l.bf16 %v3435_v37 }
0x1368   :  { %v3250_v51 = vpack.c.bf16 %v3437_v43, %v3436_v44  ;;  %v2441_v43 = vrot.slane %v4175_v9, %v130_v31  ;;  %v2549_v31 = vld [vmem:[%s4266_s3] sm:$0xff] }
0x1369   :  { %v3440_v50 = vpop.permute.xlu1 %3439 }
0x136a   :  { %v3442_v52 = vunpack.i.h.bf16 %v3440_v50  ;;  %v3441_v53 = vunpack.i.l.bf16 %v3440_v50 }
0x136c   :  { %v3508_v17 = vpop.eup %3507  ;;  %v3254_v57 = vpack.c.bf16 %v3442_v52, %v3441_v53 }
0x136d   :  { %v2183_v34 = vsel %vm94_vm0, %v3508_v17, 0.0  ;;  %v3510_v21 = vpop.eup %3509  ;;  %v2288_v14 = vpop.permute.xlu1 %2287 }
0x136e   :  { %2184 = vadd.xlane.f32.xlu0 %v2183_v34  ;;  %v2180_v10 = vsel %vm94_vm0, %v3510_v21, 0.0  ;;  %v2308_v25 = vsel %vm229_vm1, %v4073_v13, %v2288_v14  ;;  %v2450_v34 = vld [vmem:[%s4265_s2 + $0x10] sm:$0xff]  ;;  %v2554_v14 = vld [vmem:[%s4266_s3 + $0x28] sm:$0xff] }
0x1371   :  { %v2296_v62 = vpop.permute.xlu1 %2295 }
0x1372   :  { %2181 = vadd.xlane.f32.xlu0 %v2180_v10  ;;  %v2310_v4 = vsel %vm317_vm3, %v2308_v25, %v2296_v62  ;;  %v2555_v62 = vld [vmem:[%s4266_s3 + $0x30] sm:$0xff] }
0x1388   :  { %3424 = vrot.lane.b32.xlu0 %v4019_v11, %s3654_s21  ;;  %v3246_v11 = vpack.c.bf16 %v3432_v39, %v3431_v40 }
0x138c   :  { %2285 = vrot.lane.b32.xlu0 %v4109_v0, %s3644_s14 }
0x1390   :  { %2293 = vrot.lane.b32.xlu0 %v2056_v8, %s3659_s4 }
0x13fb   :  { %v2185_v1 = vpop.xlane.xlu0 %2184 }
0x13ff   :  { %v2182_v36 = vpop.xlane.xlu0 %2181 }
0x1400   :  { %3511 = vrcp.f32 %v2182_v36 }
0x1401   :  { %3513 = vrcp.f32 %v2185_v1  ;;  %v2452_v1 = vld [vmem:[%s4265_s2 + $0x40] sm:$0xff] }
0x1402   :  { %v3262_v36 = vpack.c.bf16 %v2453_v35, %v2452_v1 }
0x1403   :  { %v3425_v38 = vpop.permute.xlu0 %3424 }
0x1404   :  { %v3427_v41 = vunpack.i.h.bf16 %v3425_v38  ;;  %v3426_v30 = vunpack.i.l.bf16 %v3425_v38 }
0x1406   :  { %v3242_v46 = vpack.c.bf16 %v3427_v41, %v3426_v30 }
0x1407   :  { %v2286_v60 = vpop.permute.xlu0 %2285 }
0x1408   :  { %3243 = vmatprep.subr.bf16.mxu1 %v3242_v46  ;;  %v2307_v45 = vsel %vm229_vm1, %v4075_v48, %v2286_v60  ;;  %v2316_v48 = vrot.slane %v4175_v9, %v124_v29 }
0x1409   :  { %3245 = vmatpush3.bf16.msra.mxu1 %v3242_v46  ;;  %v2447_v46 = vrot.slane %v4175_v9, %v140_v42 }
0x140a   :  { %v3512_v0 = vpop.eup %3511  ;;  %3247 = vmatprep.subr.bf16.mxu1 %v3246_v11 }
0x140b   :  { %v3514_v54 = vpop.eup %3513  ;;  %v2188_v56 = vmul.f32 %v3512_v0, %v3510_v21  ;;  %v2294_v2 = vpop.permute.xlu0 %2293  ;;  %v2451_v21 = vld [vmem:[%s4265_s2 + $0x28] sm:$0xff] }
0x140c   :  { %v2189_v58 = vmul.f32 %v3514_v54, %v3508_v17  ;;  %v2309_v61 = vsel %vm317_vm3, %v2307_v45, %v2294_v2  ;;  %v3258_v10 = vpack.c.bf16 %v2451_v21, %v2450_v34  ;;  %v2556_v2 = vld [vmem:[%s4266_s3 + $0x38] sm:$0xff] }
0x140d   :  { %3249 = vmatpush3.bf16.msra.mxu1 %v3246_v11  ;;  %3054 = vmatprep.mubr.msk.f32.mxu1 %vm94_vm0, %v2188_v56  ;;  %v2550_v56 = vld [vmem:[%s4266_s3 + $0x8] sm:$0xff]  ;;  %v3278_v45 = vpack.c.bf16 %v2556_v2, %v2555_v62 }
0x140e   :  { %3251 = vmatprep.subr.bf16.mxu1 %v3250_v51  ;;  %3259 = vmatprep.subr.bf16.mxu0 %v3258_v10  ;;  %v3266_v42 = vpack.c.bf16 %v2550_v56, %v2549_v31 }
0x140f   :  { %3261 = vmatpush3.bf16.msra.mxu0 %v3258_v10 }
0x1410   :  { %3055 = vmatmul.mubr.msk.f32.vlgmr.msra.gmra.mrb[14].mxu1 %vm94_vm0, %v2189_v58  ;;  %3263 = vmatprep.subr.bf16.mxu0 %v3262_v36  ;;  %v2552_v58 = vld [vmem:[%s4266_s3 + $0x18] sm:$0xff] }
0x1411   :  { %3253 = vmatpush3.bf16.msra.mxu1 %v3250_v51 }
0x1412   :  { %3255 = vmatprep.subr.bf16.mxu1 %v3254_v57 }
0x1413   :  { %3265 = vmatpush3.bf16.msra.mxu0 %v3262_v36 }
0x1415   :  { %3257 = vmatpush3.bf16.msra.mxu1 %v3254_v57  ;;  %v2551_v57 = vld [vmem:[%s4266_s3 + $0x10] sm:$0xff] }
0x1416   :  { %3267 = vmatprep.subr.bf16.mxu1 %v3266_v42 }
0x14e3   :  { %v3056_v47 = vpop.f32.mrb[14].mxu1 }
0x14e4   :  { %2303 = vrot.lane.b32.xlu1 %v3056_v47, %s3660_s25  ;;  %v2274_v59 = vpop.f32.mrb[15].mxu1  ;;  %v3270_v47 = vpack.c.bf16 %v2552_v58, %v2551_v57 }
0x14e5   :  { %2301 = vrot.lane.b32.xlu0 %v2274_v59, %s3660_s25  ;;  %v2553_v59 = vld [vmem:[%s4266_s3 + $0x20] sm:$0xff]  ;;  %s3661_s3 = smov [#allocation10]  }
0x14e6   :  { %v3274_v60 = vpack.c.bf16 %v2554_v14, %v2553_v59  ;;  %s2652_s8 = sshll.u32 %s3661_s3, 4  ;;  %s2653_s8 = int_to_ptr.vmem [resolvable:$true] %s2652_s8 }
0x14e7   :  { %s3611_s9 = scalar_lea.vmem %s2653_s8, 256  ;;  %p3616_p5 = scmp.lt.s32.totalorder %s2653_s8, %s2653_s8 }
0x14e8   :  { %p3612_p4 = scmp.ne.s32.totalorder %s2653_s8, %s3611_s9  ;;  %p3617_p6 = scmp.lt.s32.totalorder %s3611_s9, %s3611_s9 }
0x14ea   :  { %p3618_p7 = por %p3617_p6, %p3616_p5 }
0x14ec   :  { %p3619_p8 = pnand %p3618_p7, %p3612_p4 }
0x1556   :  { %v2304_v26 = vpop.permute.xlu1 %2303 }
0x1557   :  { %v2302_v3 = vpop.permute.xlu0 %2301  ;;  %v2312_v8 = vsel %vm1067_vm4, %v2310_v4, %v2304_v26  ;;  %v2457_v26 = vrot.slane %v4175_v9, %v1072_v63  ;;  %v2560_v63 = vrot.slane %v4175_v9, %v1201_v49 }
0x1558   :  { %v2311_v7 = vsel %vm1067_vm4, %v2309_v61, %v2302_v3 }
0x1559   :  { %3065 = vmatprep.mubr.msk.f32.mxu1 %vm94_vm0, %v2311_v7 }
0x155a   :  { %3066 = vmatmul.mubr.msk.f32.vlgmr.msra.gmra.mrb[16].mxu1 %vm94_vm0, %v2312_v8 }
0x155b   :  { %3269 = vmatpush3.bf16.msra.mxu1 %v3266_v42 }
0x155c   :  { %3271 = vmatprep.subr.bf16.mxu1 %v3270_v47 }
0x155f   :  { %3273 = vmatpush3.bf16.msra.mxu1 %v3270_v47 }
0x1560   :  { %3275 = vmatprep.subr.bf16.mxu1 %v3274_v60 }
0x1563   :  { %3277 = vmatpush3.bf16.msra.mxu1 %v3274_v60 }
0x1564   :  { %3279 = vmatprep.subr.bf16.mxu1 %v3278_v45 }
0x1567   :  { %3281 = vmatpush3.bf16.msra.mxu1 %v3278_v45 }
0x162d   :  { %v3067_v13 = vpop.f32.mrb[16].mxu1 }
0x162e   :  { %v2407_v12 = vadd.f32 %v3067_v13, %v2316_v48  ;;  %v2401_v18 = vpop.f32.mrb[17].mxu1 }
0x162f   :  { %v2402_v20 = vadd.f32 %v2401_v18, %v2316_v48 }
0x1630   :  { %v4181_v15 = vadd.f32 %v2407_v12, %v3970_v5 }
0x1631   :  { %v4184_v16 = vadd.f32 %v2402_v20, %v3973_v6 }
0x1632   :  { %v2415_v22 = vsel %vm94_vm0, %v4181_v15, 0.0 }
0x1633   :  { %2416 = vadd.xlane.f32.xlu1 %v2415_v22  ;;  %v2412_v23 = vsel %vm94_vm0, %v4184_v16, 0.0 }
0x1634   :  { %2413 = vadd.xlane.f32.xlu0 %v2412_v23 }
0x16c0   :  { %v2417_v55 = vpop.xlane.xlu1 %2416 }
0x16c1   :  { %v2419_v29 = vmul.f32 0.03125, %v2417_v55  ;;  %v2414_v19 = vpop.xlane.xlu0 %2413 }
0x16c2   :  { %v2418_v24 = vmul.f32 0.03125, %v2414_v19 }
0x16c3   :  { %v2421_v28 = vsub.f32 %v4181_v15, %v2419_v29 }
0x16c4   :  { %v2420_v5 = vsub.f32 %v4184_v16, %v2418_v24 }
0x16c5   :  { %v2423_v33 = vmul.f32 %v2421_v28, %v2421_v28 }
0x16c6   :  { %v2422_v32 = vmul.f32 %v2420_v5, %v2420_v5 }
0x16c7   :  { %v2427_v17 = vsel %vm94_vm0, %v2423_v33, 0.0 }
0x16c8   :  { %v2424_v6 = vsel %vm94_vm0, %v2422_v32, 0.0 }
0x16c9   :  { %2425 = vadd.xlane.f32.xlu0 %v2424_v6 }
0x16cd   :  { %2428 = vadd.xlane.f32.xlu0 %v2427_v17 }
0x1756   :  { %v2426_v37 = vpop.xlane.xlu0 %2425 }
0x1757   :  { %v2430_v38 = vmul.f32 0.03125, %v2426_v37 }
0x1759   :  { %v2432_v39 = vadd.f32 1e-05, %v2430_v38 }
0x175a   :  { %v2429_v40 = vpop.xlane.xlu0 %2428 }
0x175b   :  { %3515 = vrsqrt.f32 %v2432_v39  ;;  %v2431_v41 = vmul.f32 0.03125, %v2429_v40 }
0x175d   :  { %v2433_v30 = vadd.f32 1e-05, %v2431_v41 }
0x175f   :  { %3517 = vrsqrt.f32 %v2433_v30 }
0x1765   :  { %v3516_v44 = vpop.eup %3515 }
0x1766   :  { %v2436_v11 = vmul.f32 %v3516_v44, %v2420_v5 }
0x1768   :  { %v2442_v50 = vmul.f32 %v2441_v43, %v2436_v11 }
0x1769   :  { %v3518_v0 = vpop.eup %3517 }
0x176a   :  { %v2437_v51 = vmul.f32 %v3518_v0, %v2421_v28  ;;  %v2448_v52 = vadd.f32 %v2447_v46, %v2442_v50 }
0x176c   :  { %v2443_v53 = vmul.f32 %v2441_v43, %v2437_v51  ;;  %3076 = vmatprep.mubr.msk.f32.mxu0 %vm94_vm0, %v2448_v52 }
0x176e   :  { %v2449_v54 = vadd.f32 %v2447_v46, %v2443_v53 }
0x1770   :  { %3077 = vmatmul.mubr.msk.f32.vlgmr.msra.gmra.mrb[26].mxu0 %vm94_vm0, %v2449_v54 }
0x1843   :  { %v3078_v25 = vpop.f32.mrb[26].mxu0 }
0x1844   :  { %v2536_v61 = vadd.f32 %v3078_v25, %v2457_v26  ;;  %v2530_v3 = vpop.f32.mrb[27].mxu0 }
0x1845   :  { %v2531_v4 = vadd.f32 %v2530_v3, %v2457_v26 }
0x1846   :  { %v2542_v7 = vmul.f32 0.70710677, %v2536_v61  ;;  %v2540_v22 = vmul.f32 0.5, %v2536_v61 }
0x1847   :  { %v2541_v8 = vmul.f32 0.70710677, %v2531_v4  ;;  %v2539_v18 = vmul.f32 0.5, %v2531_v4 }
0x1848   :  { %3519 = verf.f32 %v2542_v7 }
0x1849   :  { %3521 = verf.f32 %v2541_v8 }
0x1852   :  { %v3520_v48 = vpop.eup %3519 }
0x1853   :  { %v3522_v13 = vpop.eup %3521  ;;  %v2546_v12 = vadd.f32 1.0, %v3520_v48 }
0x1854   :  { %v2545_v20 = vadd.f32 1.0, %v3522_v13 }
0x1855   :  { %v2548_v55 = vmul.f32 %v2546_v12, %v2540_v22 }
0x1856   :  { %v2547_v23 = vmul.f32 %v2545_v20, %v2539_v18 }
0x1858   :  { %3095 = vmatprep.mubr.msk.f32.mxu1 %vm2561_vm5, %v2547_v23 }
0x1859   :  { %3096 = vmatmul.mubr.msk.f32.vlgmr.msra.gmra.mrb[18].mxu1 %vm2561_vm5, %v2548_v55 }
0x192c   :  { %v3097_v29 = vpop.f32.mrb[18].mxu1 }
0x192d   :  { %v2640_v19 = vadd.f32 %v3097_v29, %v2560_v63  ;;  %v2634_v24 = vpop.f32.mrb[19].mxu1 }
0x192e   :  { %v2635_v28 = vadd.f32 %v2634_v24, %v2560_v63 }
0x192f   :  { %v2644_v5 = vadd.f32 %v2640_v19, %v4181_v15 }
0x1930   :  { %v2643_v32 = vadd.f32 %v2635_v28, %v4184_v16 }
0x1931   :  { %2646 = vst.msk [vmem:[#allocation10 + $0x8] sm:$0xff] %vm94_vm0, %v2644_v5 }
0x1932   :  { %2645 = vst.msk [vmem:[#allocation10] sm:$0xff] %vm94_vm0, %v2643_v32 }
0x1933   :  { %3622 = shalt.err (!%p3619_p8)
}
0x1934   :  { %s3623_s12 = scalar_lea.hbm %s4270_s7, 256 }
0x1935   :  { %p3624_p9 = scmp.ne.s32.totalorder %s4270_s7, %s3623_s12  ;;  %p3627_p10 = scmp.lt.u32.totalorder %s3623_s12, %s4270_s7 }
0x1937   :  { %p3629_p11 = pnand %p3627_p10, %p3624_p9 }
0x1939   :  { %3632 = shalt.err (!%p3629_p11)
}
0x193a   :  { %2658 = dma.vmem_to_hbm [thread:$0]  %s2653_s8, 256, %s4270_s7, [#allocation4], %s3643_s13, %s3643_s13, %s3644_s14  }
0x193b   :  { %3639 = dma.done.wait [#allocation4], 256  }
0x193c   :  { %3640 = vsyncadd [#allocation4], 4294967040 }
0x193d   :  { %2662 = vsyncpa [#allocation3], 1 }
0x193e   :  { %2663 = vsyncpa [#allocation6], 1 }
0x193f   :  { %2664 = vsyncpa [#allocation9], 1 }
0x1940   :  { %2665 = vsyncpa [#allocation4], 1 }

</bundles_post_ra>
